<compile_context>
chip_gen: v5e
topology: v5e:2x2
jax: 0.10.0
libtpu: 0.0.40
codegen_flags: <defaults>
</compile_context>

<pallas_src>
import numpy as np

import jax
import jax.numpy as jnp
from jax import lax
from jax.experimental import pallas as pl
from jax.experimental.pallas import tpu as pltpu


C_IN, C_MID, C_OUT = 4, 16, 32


def _pick_images_per_step(n):
    """Largest image block per grid step that still leaves >= 2 grid steps
    (keeps both v7x TensorCores busy); capped at 32 to bound live vector state
    in the depthwise accumulate."""
    for b in (32, 16, 8, 4, 2, 1):
        if n % b == 0 and n // b >= 2:
            return b
    return n  # n == 1


# ----------------------------------------------------------------------------
# Single fused Pallas kernel: B images per grid step, all stages lane-dense.
# ----------------------------------------------------------------------------

def _fused_net_kernel(xr_ref, a_ref, bstem_ref, wdw_ref, bdw_ref,
                      bigpw_ref, bpw_ref, o_ref, yp_ref):
    """stem (banded matmuls) -> depthwise 3x3 -> pointwise (block-diag) -> pool.

    xr_ref    : (B, H+2, (W+2)*C_IN)       bf16  padded image, lane-dense rows
    a_ref     : (3, (W+2)*C_IN, W*C_MID)   bf16  banded stem weights (one per dy)
    bstem_ref : (1, W*C_MID)               f32   stem bias, tiled across W
    wdw_ref   : (9, 1, 1, W*C_MID)         f32   depthwise taps, tiled across W
    bdw_ref   : (1, 1, W*C_MID)            f32
    bigpw_ref : (W*C_MID, W*C_OUT)         bf16  block-diagonal pointwise weight
    bpw_ref   : (1, W*C_OUT)               f32
    o_ref     : (B, C_OUT)                 f32   pooled output block
    yp_ref    : (B, H+2, (W+2)*C_MID)      f32   VMEM scratch (zero halo = SAME pad)
    """
    bn, hp, _ = xr_ref.shape
    h = hp - 2
    wcm = a_ref.shape[-1]            # W * C_MID
    w = wcm // C_MID
    wco = bigpw_ref.shape[-1]        # W * C_OUT
    c_out = wco // w

    # ---- stem: 3 banded matmuls on the MXU (im2col lives in the weights) ----
    y = jnp.dot(xr_ref[:, 0:h, :].reshape(bn * h, -1), a_ref[0],
                preferred_element_type=jnp.float32)
    for dy in (1, 2):
        y = y + jnp.dot(xr_ref[:, dy:dy + h, :].reshape(bn * h, -1), a_ref[dy],
                        preferred_element_type=jnp.float32)
    y = jnp.clip(y + bstem_ref[...], 0.0, 6.0)                # (B*H, W*C_MID)

    # ---- depthwise 3x3: SAME padding via halo-only zeroing of the scratch ---
    # Re-zero only the halo every step (rows 0 / H+1 plus two 16-lane strips,
    # ~4.6 KB per image); the interior is fully overwritten right below.  Per-
    # step re-zeroing keeps megacore grid-splitting correct on v7x.
    zrow = jnp.zeros((bn, 1, yp_ref.shape[-1]), jnp.float32)
    yp_ref[:, 0:1, :] = zrow
    yp_ref[:, hp - 1:hp, :] = zrow
    zcol = jnp.zeros((bn, hp, C_MID), jnp.float32)
    yp_ref[:, :, 0:C_MID] = zcol
    yp_ref[:, :, (w + 1) * C_MID:(w + 2) * C_MID] = zcol
    yp_ref[:, 1:h + 1, C_MID:C_MID + wcm] = y.reshape(bn, h, wcm)

    # 9 taps, lane-dense: dx -> 16-lane offset, dy -> row offset.
    acc = None
    for t in range(9):                       # unrolled, static slices
        dy, dx = divmod(t, 3)
        tap = yp_ref[:, dy:dy + h, dx * C_MID:dx * C_MID + wcm]
        term = tap * wdw_ref[t]              # (1,1,W*C_MID) broadcast
        acc = term if acc is None else acc + term
    yd = jnp.clip(acc + bdw_ref[...], 0.0, 6.0)                # (B, H, W*C_MID)

    # ---- pointwise 1x1 as block-diagonal matmul + fused global avg pool -----
    z = jnp.dot(yd.reshape(bn * h, wcm).astype(jnp.bfloat16), bigpw_ref[...],
                preferred_element_type=jnp.float32)            # (B*H, W*C_OUT)
    z = jnp.clip(z + bpw_ref[...], 0.0, 6.0)

    zs = z.reshape(bn, h, wco).sum(axis=1)                     # (B, W*C_OUT)
    pooled = zs[:, 0:c_out]
    for i in range(1, w):                                      # static lane slices
        pooled = pooled + zs[:, i * c_out:(i + 1) * c_out]
    o_ref[...] = pooled * (1.0 / (h * w))                      # (B, C_OUT)


# ----------------------------------------------------------------------------
# Parameters + wrapper (BN folding, banded / block-diag weight build, padding)
# ----------------------------------------------------------------------------

def make_params(key):
    ks = jax.random.split(key, 8)
    return {
        # stem 3x3 conv, HWIO
        "w_stem": 0.1 * jax.random.normal(ks[0], (3, 3, C_IN, C_MID), jnp.float32),
        "s_stem": 1.0 + 0.1 * jax.random.normal(ks[1], (C_MID,), jnp.float32),
        "b_stem": 0.1 * jax.random.normal(ks[2], (C_MID,), jnp.float32),
        # depthwise 3x3
        "w_dw": 0.1 * jax.random.normal(ks[3], (3, 3, C_MID), jnp.float32),
        "s_dw": 1.0 + 0.1 * jax.random.normal(ks[4], (C_MID,), jnp.float32),
        "b_dw": 0.1 * jax.random.normal(ks[5], (C_MID,), jnp.float32),
        # pointwise 1x1
        "w_pw": 0.1 * jax.random.normal(ks[6], (C_MID, C_OUT), jnp.float32),
        "s_pw": jnp.ones((C_OUT,), jnp.float32),
        "b_pw": 0.1 * jax.random.normal(ks[7], (C_OUT,), jnp.float32),
    }


@jax.jit
def net_forward_pallas(x_nchw, p):
    x = jnp.transpose(x_nchw, (0, 2, 3, 1)).astype(jnp.float32)  # NCHW -> NHWC
    N, H, W, _ = x.shape
    Hp, Wp = H + 2, W + 2
    bn = _pick_images_per_step(N)
    grid_n = N // bn

    # ---- fold BN scales (tiny one-off XLA ops under jit) --------------------
    wstem_s = p["w_stem"] * p["s_stem"]                 # (3,3,C_IN,C_MID)
    wdw_s = p["w_dw"] * p["s_dw"]                       # (3,3,C_MID)
    wpw_s = p["w_pw"] * p["s_pw"][None, :]              # (C_MID,C_OUT)

    # ---- banded stem weight: A[dy, w2*C_IN+ci, w*C_MID+co] = Wstem[dy,w2-w,ci,co]
    sel = np.zeros((Wp, 3, W), np.float32)              # trace-time constant
    for dx in range(3):
        sel[dx:dx + W, dx, :] += np.eye(W, dtype=np.float32)
    a_stem = jnp.einsum("pdw,edco->epcwo", jnp.asarray(sel), wstem_s)
    a_stem = a_stem.reshape(3, Wp * C_IN, W * C_MID).astype(jnp.bfloat16)
    b_stem_t = jnp.tile(p["b_stem"], W).reshape(1, W * C_MID)

    # ---- depthwise weights / bias tiled across W (lane-dense broadcast) -----
    wdw_t = jnp.tile(wdw_s.reshape(9, C_MID), (1, W)).reshape(9, 1, 1, W * C_MID)
    b_dw_t = jnp.tile(p["b_dw"], W).reshape(1, 1, W * C_MID)

    # ---- block-diagonal pointwise weight: W identical (C_MID, C_OUT) blocks -
    eye_w = jnp.eye(W, dtype=jnp.float32)
    bigpw = (eye_w[:, None, :, None] * wpw_s[None, :, None, :]) \
        .reshape(W * C_MID, W * C_OUT).astype(jnp.bfloat16)
    b_pw_t = jnp.tile(p["b_pw"], W).reshape(1, W * C_OUT)

    # ---- padded raw image, lane-dense rows: (N, H+2, (W+2)*C_IN) bf16 -------
    xp = jnp.pad(x, ((0, 0), (1, 1), (1, 1), (0, 0)))
    xr = xp.reshape(N, Hp, Wp * C_IN).astype(jnp.bfloat16)

    flops = N * (3 * H * (Wp * C_IN) * (W * C_MID) * 2
                 + 9 * H * W * C_MID * 2
                 + H * (W * C_MID) * (W * C_OUT) * 2)
    bytes_accessed = (xr.size * 2 + a_stem.size * 2 + bigpw.size * 2
                      + (wdw_t.size + b_stem_t.size + b_dw_t.size + b_pw_t.size) * 4
                      + N * C_OUT * 4)

    pooled = pl.pallas_call(
        _fused_net_kernel,
        out_shape=jax.ShapeDtypeStruct((grid_n, bn, C_OUT), jnp.float32),
        grid=(grid_n,),
        in_specs=[
            pl.BlockSpec((bn, Hp, Wp * C_IN), lambda n: (n, 0, 0)),        # image
            pl.BlockSpec((3, Wp * C_IN, W * C_MID), lambda n: (0, 0, 0)),  # stem W
            pl.BlockSpec((1, W * C_MID), lambda n: (0, 0)),                # stem b
            pl.BlockSpec((9, 1, 1, W * C_MID), lambda n: (0, 0, 0, 0)),    # dw W
            pl.BlockSpec((1, 1, W * C_MID), lambda n: (0, 0, 0)),          # dw b
            pl.BlockSpec((W * C_MID, W * C_OUT), lambda n: (0, 0)),        # pw W
            pl.BlockSpec((1, W * C_OUT), lambda n: (0, 0)),                # pw b
        ],
        out_specs=pl.BlockSpec((None, bn, C_OUT), lambda n: (n, 0, 0)),
        scratch_shapes=[
            pltpu.VMEM((bn, Hp, Wp * C_MID), jnp.float32),   # padded DW buffer
        ],
        compiler_params=pltpu.CompilerParams(
            dimension_semantics=("parallel",)),
        cost_estimate=pl.CostEstimate(flops=flops, transcendentals=0,
                                      bytes_accessed=bytes_accessed),
    )(xr, a_stem, b_stem_t, wdw_t, b_dw_t, bigpw, b_pw_t)

    # AdaptiveAvgPool2d(1) result, returned NCHW: (N, C_OUT, 1, 1)
    return pooled.reshape(N, C_OUT)[:, :, None, None]


# ----------------------------------------------------------------------------
# Plain-JAX reference (independent: lax.conv_general_dilated, all f32)
# ----------------------------------------------------------------------------

def net_forward_reference(x_nchw, p):
    x = jnp.transpose(x_nchw, (0, 2, 3, 1)).astype(jnp.float32)
    dn = ("NHWC", "HWIO", "NHWC")

    y = lax.conv_general_dilated(x, p["w_stem"], (1, 1), "SAME",
                                 dimension_numbers=dn)
    y = jnp.clip(y * p["s_stem"] + p["b_stem"], 0.0, 6.0)

    wd = p["w_dw"].reshape(3, 3, 1, C_MID)
    y = lax.conv_general_dilated(y, wd, (1, 1), "SAME", dimension_numbers=dn,
                                 feature_group_count=C_MID)
    y = jnp.clip(y * p["s_dw"] + p["b_dw"], 0.0, 6.0)

    y = jnp.einsum("nhwi,io->nhwo", y, p["w_pw"])
    y = jnp.clip(y * p["s_pw"] + p["b_pw"], 0.0, 6.0)

    pooled = jnp.mean(y, axis=(1, 2))
    return pooled[:, :, None, None]


if __name__ == "__main__":
    key = jax.random.PRNGKey(0)
    k_x, k_p = jax.random.split(key)
    x = jax.random.normal(k_x, (2, 4, 16, 16), jnp.float32)   # NCHW, like PyTorch
    params = make_params(k_p)

    out = jax.block_until_ready(net_forward_pallas(x, params))
    ref = net_forward_reference(x, params)

    assert out.shape == (2, C_OUT, 1, 1), out.shape
    max_err = float(jnp.max(jnp.abs(out - ref)))
    # bf16 MXU operands with f32 accumulation -> tolerance loosened vs f32 ref.
    assert jnp.allclose(out, ref, atol=3e-2, rtol=3e-2), max_err

    print("KERNEL_OK")
</pallas_src>

<mosaic_0001>
module attributes {stable_mosaic.version = 11 : i64} {
  func.func @_fused_net_kernel(%arg0: i32, %arg1: memref<1x18x72xbf16, #tpu.memory_space<vmem>>, %arg2: memref<3x72x256xbf16, #tpu.memory_space<vmem>>, %arg3: memref<1x256xf32, #tpu.memory_space<vmem>>, %arg4: memref<9x1x1x256xf32, #tpu.memory_space<vmem>>, %arg5: memref<1x1x256xf32, #tpu.memory_space<vmem>>, %arg6: memref<256x512xbf16, #tpu.memory_space<vmem>>, %arg7: memref<1x512xf32, #tpu.memory_space<vmem>>, %arg8: memref<1x1x32xf32, #tpu.memory_space<vmem>>, %arg9: memref<1x18x288xf32, #tpu.memory_space<vmem>>) attributes {dimension_semantics = [#tpu.dimension_semantics<parallel>], iteration_bounds = array<i64: 2>, scalar_prefetch = 0 : i64, scratch_operands = 1 : i64, tpu.core_type = #tpu.core_type<tc>, window_params = [{transform_indices = @transform_0, window_bounds = array<i64: 1, 18, 72>}, {pipeline_mode = #tpu.pipeline_mode<synchronous>, transform_indices = @transform_1, window_bounds = array<i64: 3, 72, 256>}, {pipeline_mode = #tpu.pipeline_mode<synchronous>, transform_indices = @transform_2, window_bounds = array<i64: 1, 256>}, {pipeline_mode = #tpu.pipeline_mode<synchronous>, transform_indices = @transform_3, window_bounds = array<i64: 9, 1, 1, 256>}, {pipeline_mode = #tpu.pipeline_mode<synchronous>, transform_indices = @transform_4, window_bounds = array<i64: 1, 1, 256>}, {pipeline_mode = #tpu.pipeline_mode<synchronous>, transform_indices = @transform_5, window_bounds = array<i64: 256, 512>}, {pipeline_mode = #tpu.pipeline_mode<synchronous>, transform_indices = @transform_6, window_bounds = array<i64: 1, 512>}, {transform_indices = @transform_7, window_bounds = array<i64: 1, 1, 32>}]} {
    %c0 = arith.constant 0 : index
    %c0_0 = arith.constant 0 : index
    %c0_1 = arith.constant 0 : index
    %0 = vector.load %arg1[%c0, %c0_0, %c0_1] : memref<1x18x72xbf16, #tpu.memory_space<vmem>>, vector<1x16x72xbf16>
    %1 = vector.shape_cast %0 : vector<1x16x72xbf16> to vector<16x72xbf16>
    %c0_2 = arith.constant 0 : index
    %c0_3 = arith.constant 0 : index
    %c0_4 = arith.constant 0 : index
    %2 = vector.load %arg2[%c0_2, %c0_3, %c0_4] : memref<3x72x256xbf16, #tpu.memory_space<vmem>>, vector<1x72x256xbf16>
    %3 = vector.shape_cast %2 : vector<1x72x256xbf16> to vector<72x256xbf16>
    %cst = arith.constant dense<0.000000e+00> : vector<16x256xf32>
    %4 = tpu.matmul %1, %3, %cst {dimension_numbers = #tpu.dot_dimension_numbers<[1], [0], [0], [1], [0, 0, 1, 1], [], []>} : vector<16x72xbf16>, vector<72x256xbf16>, vector<16x256xf32> -> vector<16x256xf32>
    %c0_5 = arith.constant 0 : index
    %c1 = arith.constant 1 : index
    %c0_6 = arith.constant 0 : index
    %5 = vector.load %arg1[%c0_5, %c1, %c0_6] : memref<1x18x72xbf16, #tpu.memory_space<vmem>>, vector<1x16x72xbf16>
    %6 = vector.shape_cast %5 : vector<1x16x72xbf16> to vector<16x72xbf16>
    %c1_7 = arith.constant 1 : index
    %c0_8 = arith.constant 0 : index
    %c0_9 = arith.constant 0 : index
    %7 = vector.load %arg2[%c1_7, %c0_8, %c0_9] : memref<3x72x256xbf16, #tpu.memory_space<vmem>>, vector<1x72x256xbf16>
    %8 = vector.shape_cast %7 : vector<1x72x256xbf16> to vector<72x256xbf16>
    %cst_10 = arith.constant dense<0.000000e+00> : vector<16x256xf32>
    %9 = tpu.matmul %6, %8, %cst_10 {dimension_numbers = #tpu.dot_dimension_numbers<[1], [0], [0], [1], [0, 0, 1, 1], [], []>} : vector<16x72xbf16>, vector<72x256xbf16>, vector<16x256xf32> -> vector<16x256xf32>
    %10 = arith.addf %4, %9 : vector<16x256xf32>
    %c0_11 = arith.constant 0 : index
    %c2 = arith.constant 2 : index
    %c0_12 = arith.constant 0 : index
    %11 = vector.load %arg1[%c0_11, %c2, %c0_12] : memref<1x18x72xbf16, #tpu.memory_space<vmem>>, vector<1x16x72xbf16>
    %12 = vector.shape_cast %11 : vector<1x16x72xbf16> to vector<16x72xbf16>
    %c2_13 = arith.constant 2 : index
    %c0_14 = arith.constant 0 : index
    %c0_15 = arith.constant 0 : index
    %13 = vector.load %arg2[%c2_13, %c0_14, %c0_15] : memref<3x72x256xbf16, #tpu.memory_space<vmem>>, vector<1x72x256xbf16>
    %14 = vector.shape_cast %13 : vector<1x72x256xbf16> to vector<72x256xbf16>
    %cst_16 = arith.constant dense<0.000000e+00> : vector<16x256xf32>
    %15 = tpu.matmul %12, %14, %cst_16 {dimension_numbers = #tpu.dot_dimension_numbers<[1], [0], [0], [1], [0, 0, 1, 1], [], []>} : vector<16x72xbf16>, vector<72x256xbf16>, vector<16x256xf32> -> vector<16x256xf32>
    %16 = arith.addf %10, %15 : vector<16x256xf32>
    %c0_17 = arith.constant 0 : index
    %c0_18 = arith.constant 0 : index
    %17 = vector.load %arg3[%c0_17, %c0_18] : memref<1x256xf32, #tpu.memory_space<vmem>>, vector<1x256xf32>
    %18 = vector.broadcast %17 : vector<1x256xf32> to vector<16x256xf32>
    %19 = arith.addf %16, %18 : vector<16x256xf32>
    %cst_19 = arith.constant 0.000000e+00 : f32
    %cst_20 = arith.constant 6.000000e+00 : f32
    %20 = vector.broadcast %cst_19 : f32 to vector<16x256xf32>
    %21 = arith.maximumf %20, %19 : vector<16x256xf32>
    %22 = vector.broadcast %cst_20 : f32 to vector<16x256xf32>
    %23 = arith.minimumf %22, %21 : vector<16x256xf32>
    %cst_21 = arith.constant 0.000000e+00 : f32
    %24 = vector.broadcast %cst_21 : f32 to vector<1x1x288xf32>
    %c0_22 = arith.constant 0 : index
    %c0_23 = arith.constant 0 : index
    %c0_24 = arith.constant 0 : index
    %25 = vector.load %arg9[%c0_22, %c0_23, %c0_24] : memref<1x18x288xf32, #tpu.memory_space<vmem>>, vector<1x1x288xf32>
    tpu.vector_store %arg9[%c0_22, %c0_23, %c0_24], %24 {strides = array<i32>} : memref<1x18x288xf32, #tpu.memory_space<vmem>>, vector<1x1x288xf32>,
    %c0_25 = arith.constant 0 : index
    %c17 = arith.constant 17 : index
    %c0_26 = arith.constant 0 : index
    %26 = vector.load %arg9[%c0_25, %c17, %c0_26] : memref<1x18x288xf32, #tpu.memory_space<vmem>>, vector<1x1x288xf32>
    tpu.vector_store %arg9[%c0_25, %c17, %c0_26], %24 {strides = array<i32>} : memref<1x18x288xf32, #tpu.memory_space<vmem>>, vector<1x1x288xf32>,
    %cst_27 = arith.constant 0.000000e+00 : f32
    %27 = vector.broadcast %cst_27 : f32 to vector<1x18x16xf32>
    %c0_28 = arith.constant 0 : index
    %c0_29 = arith.constant 0 : index
    %c0_30 = arith.constant 0 : index
    %28 = vector.load %arg9[%c0_28, %c0_29, %c0_30] : memref<1x18x288xf32, #tpu.memory_space<vmem>>, vector<1x18x16xf32>
    tpu.vector_store %arg9[%c0_28, %c0_29, %c0_30], %27 {strides = array<i32>} : memref<1x18x288xf32, #tpu.memory_space<vmem>>, vector<1x18x16xf32>,
    %c0_31 = arith.constant 0 : index
    %c0_32 = arith.constant 0 : index
    %c272 = arith.constant 272 : index
    %29 = vector.load %arg9[%c0_31, %c0_32, %c272] : memref<1x18x288xf32, #tpu.memory_space<vmem>>, vector<1x18x16xf32>
    tpu.vector_store %arg9[%c0_31, %c0_32, %c272], %27 {strides = array<i32>} : memref<1x18x288xf32, #tpu.memory_space<vmem>>, vector<1x18x16xf32>,
    %30 = vector.shape_cast %23 : vector<16x256xf32> to vector<1x16x256xf32>
    %c0_33 = arith.constant 0 : index
    %c1_34 = arith.constant 1 : index
    %c16 = arith.constant 16 : index
    %31 = vector.load %arg9[%c0_33, %c1_34, %c16] : memref<1x18x288xf32, #tpu.memory_space<vmem>>, vector<1x16x256xf32>
    tpu.vector_store %arg9[%c0_33, %c1_34, %c16], %30 {strides = array<i32>} : memref<1x18x288xf32, #tpu.memory_space<vmem>>, vector<1x16x256xf32>,
    %c0_35 = arith.constant 0 : index
    %c0_36 = arith.constant 0 : index
    %c0_37 = arith.constant 0 : index
    %32 = vector.load %arg9[%c0_35, %c0_36, %c0_37] : memref<1x18x288xf32, #tpu.memory_space<vmem>>, vector<1x16x256xf32>
    %c0_38 = arith.constant 0 : index
    %c0_39 = arith.constant 0 : index
    %c0_40 = arith.constant 0 : index
    %c0_41 = arith.constant 0 : index
    %33 = vector.load %arg4[%c0_38, %c0_39, %c0_40, %c0_41] : memref<9x1x1x256xf32, #tpu.memory_space<vmem>>, vector<1x1x1x256xf32>
    %34 = vector.shape_cast %33 : vector<1x1x1x256xf32> to vector<1x1x256xf32>
    %35 = vector.broadcast %34 : vector<1x1x256xf32> to vector<1x16x256xf32>
    %36 = arith.mulf %32, %35 : vector<1x16x256xf32>
    %c0_42 = arith.constant 0 : index
    %c0_43 = arith.constant 0 : index
    %c16_44 = arith.constant 16 : index
    %37 = vector.load %arg9[%c0_42, %c0_43, %c16_44] : memref<1x18x288xf32, #tpu.memory_space<vmem>>, vector<1x16x256xf32>
    %c1_45 = arith.constant 1 : index
    %c0_46 = arith.constant 0 : index
    %c0_47 = arith.constant 0 : index
    %c0_48 = arith.constant 0 : index
    %38 = vector.load %arg4[%c1_45, %c0_46, %c0_47, %c0_48] : memref<9x1x1x256xf32, #tpu.memory_space<vmem>>, vector<1x1x1x256xf32>
    %39 = vector.shape_cast %38 : vector<1x1x1x256xf32> to vector<1x1x256xf32>
    %40 = vector.broadcast %39 : vector<1x1x256xf32> to vector<1x16x256xf32>
    %41 = arith.mulf %37, %40 : vector<1x16x256xf32>
    %42 = arith.addf %36, %41 : vector<1x16x256xf32>
    %c0_49 = arith.constant 0 : index
    %c0_50 = arith.constant 0 : index
    %c32 = arith.constant 32 : index
    %43 = vector.load %arg9[%c0_49, %c0_50, %c32] : memref<1x18x288xf32, #tpu.memory_space<vmem>>, vector<1x16x256xf32>
    %c2_51 = arith.constant 2 : index
    %c0_52 = arith.constant 0 : index
    %c0_53 = arith.constant 0 : index
    %c0_54 = arith.constant 0 : index
    %44 = vector.load %arg4[%c2_51, %c0_52, %c0_53, %c0_54] : memref<9x1x1x256xf32, #tpu.memory_space<vmem>>, vector<1x1x1x256xf32>
    %45 = vector.shape_cast %44 : vector<1x1x1x256xf32> to vector<1x1x256xf32>
    %46 = vector.broadcast %45 : vector<1x1x256xf32> to vector<1x16x256xf32>
    %47 = arith.mulf %43, %46 : vector<1x16x256xf32>
    %48 = arith.addf %42, %47 : vector<1x16x256xf32>
    %c0_55 = arith.constant 0 : index
    %c1_56 = arith.constant 1 : index
    %c0_57 = arith.constant 0 : index
    %49 = vector.load %arg9[%c0_55, %c1_56, %c0_57] : memref<1x18x288xf32, #tpu.memory_space<vmem>>, vector<1x16x256xf32>
    %c3 = arith.constant 3 : index
    %c0_58 = arith.constant 0 : index
    %c0_59 = arith.constant 0 : index
    %c0_60 = arith.constant 0 : index
    %50 = vector.load %arg4[%c3, %c0_58, %c0_59, %c0_60] : memref<9x1x1x256xf32, #tpu.memory_space<vmem>>, vector<1x1x1x256xf32>
    %51 = vector.shape_cast %50 : vector<1x1x1x256xf32> to vector<1x1x256xf32>
    %52 = vector.broadcast %51 : vector<1x1x256xf32> to vector<1x16x256xf32>
    %53 = arith.mulf %49, %52 : vector<1x16x256xf32>
    %54 = arith.addf %48, %53 : vector<1x16x256xf32>
    %c0_61 = arith.constant 0 : index
    %c1_62 = arith.constant 1 : index
    %c16_63 = arith.constant 16 : index
    %55 = vector.load %arg9[%c0_61, %c1_62, %c16_63] : memref<1x18x288xf32, #tpu.memory_space<vmem>>, vector<1x16x256xf32>
    %c4 = arith.constant 4 : index
    %c0_64 = arith.constant 0 : index
    %c0_65 = arith.constant 0 : index
    %c0_66 = arith.constant 0 : index
    %56 = vector.load %arg4[%c4, %c0_64, %c0_65, %c0_66] : memref<9x1x1x256xf32, #tpu.memory_space<vmem>>, vector<1x1x1x256xf32>
    %57 = vector.shape_cast %56 : vector<1x1x1x256xf32> to vector<1x1x256xf32>
    %58 = vector.broadcast %57 : vector<1x1x256xf32> to vector<1x16x256xf32>
    %59 = arith.mulf %55, %58 : vector<1x16x256xf32>
    %60 = arith.addf %54, %59 : vector<1x16x256xf32>
    %c0_67 = arith.constant 0 : index
    %c1_68 = arith.constant 1 : index
    %c32_69 = arith.constant 32 : index
    %61 = vector.load %arg9[%c0_67, %c1_68, %c32_69] : memref<1x18x288xf32, #tpu.memory_space<vmem>>, vector<1x16x256xf32>
    %c5 = arith.constant 5 : index
    %c0_70 = arith.constant 0 : index
    %c0_71 = arith.constant 0 : index
    %c0_72 = arith.constant 0 : index
    %62 = vector.load %arg4[%c5, %c0_70, %c0_71, %c0_72] : memref<9x1x1x256xf32, #tpu.memory_space<vmem>>, vector<1x1x1x256xf32>
    %63 = vector.shape_cast %62 : vector<1x1x1x256xf32> to vector<1x1x256xf32>
    %64 = vector.broadcast %63 : vector<1x1x256xf32> to vector<1x16x256xf32>
    %65 = arith.mulf %61, %64 : vector<1x16x256xf32>
    %66 = arith.addf %60, %65 : vector<1x16x256xf32>
    %c0_73 = arith.constant 0 : index
    %c2_74 = arith.constant 2 : index
    %c0_75 = arith.constant 0 : index
    %67 = vector.load %arg9[%c0_73, %c2_74, %c0_75] : memref<1x18x288xf32, #tpu.memory_space<vmem>>, vector<1x16x256xf32>
    %c6 = arith.constant 6 : index
    %c0_76 = arith.constant 0 : index
    %c0_77 = arith.constant 0 : index
    %c0_78 = arith.constant 0 : index
    %68 = vector.load %arg4[%c6, %c0_76, %c0_77, %c0_78] : memref<9x1x1x256xf32, #tpu.memory_space<vmem>>, vector<1x1x1x256xf32>
    %69 = vector.shape_cast %68 : vector<1x1x1x256xf32> to vector<1x1x256xf32>
    %70 = vector.broadcast %69 : vector<1x1x256xf32> to vector<1x16x256xf32>
    %71 = arith.mulf %67, %70 : vector<1x16x256xf32>
    %72 = arith.addf %66, %71 : vector<1x16x256xf32>
    %c0_79 = arith.constant 0 : index
    %c2_80 = arith.constant 2 : index
    %c16_81 = arith.constant 16 : index
    %73 = vector.load %arg9[%c0_79, %c2_80, %c16_81] : memref<1x18x288xf32, #tpu.memory_space<vmem>>, vector<1x16x256xf32>
    %c7 = arith.constant 7 : index
    %c0_82 = arith.constant 0 : index
    %c0_83 = arith.constant 0 : index
    %c0_84 = arith.constant 0 : index
    %74 = vector.load %arg4[%c7, %c0_82, %c0_83, %c0_84] : memref<9x1x1x256xf32, #tpu.memory_space<vmem>>, vector<1x1x1x256xf32>
    %75 = vector.shape_cast %74 : vector<1x1x1x256xf32> to vector<1x1x256xf32>
    %76 = vector.broadcast %75 : vector<1x1x256xf32> to vector<1x16x256xf32>
    %77 = arith.mulf %73, %76 : vector<1x16x256xf32>
    %78 = arith.addf %72, %77 : vector<1x16x256xf32>
    %c0_85 = arith.constant 0 : index
    %c2_86 = arith.constant 2 : index
    %c32_87 = arith.constant 32 : index
    %79 = vector.load %arg9[%c0_85, %c2_86, %c32_87] : memref<1x18x288xf32, #tpu.memory_space<vmem>>, vector<1x16x256xf32>
    %c8 = arith.constant 8 : index
    %c0_88 = arith.constant 0 : index
    %c0_89 = arith.constant 0 : index
    %c0_90 = arith.constant 0 : index
    %80 = vector.load %arg4[%c8, %c0_88, %c0_89, %c0_90] : memref<9x1x1x256xf32, #tpu.memory_space<vmem>>, vector<1x1x1x256xf32>
    %81 = vector.shape_cast %80 : vector<1x1x1x256xf32> to vector<1x1x256xf32>
    %82 = vector.broadcast %81 : vector<1x1x256xf32> to vector<1x16x256xf32>
    %83 = arith.mulf %79, %82 : vector<1x16x256xf32>
    %84 = arith.addf %78, %83 : vector<1x16x256xf32>
    %c0_91 = arith.constant 0 : index
    %c0_92 = arith.constant 0 : index
    %c0_93 = arith.constant 0 : index
    %85 = vector.load %arg5[%c0_91, %c0_92, %c0_93] : memref<1x1x256xf32, #tpu.memory_space<vmem>>, vector<1x1x256xf32>
    %86 = vector.broadcast %85 : vector<1x1x256xf32> to vector<1x16x256xf32>
    %87 = arith.addf %84, %86 : vector<1x16x256xf32>
    %cst_94 = arith.constant 0.000000e+00 : f32
    %cst_95 = arith.constant 6.000000e+00 : f32
    %88 = vector.broadcast %cst_94 : f32 to vector<1x16x256xf32>
    %89 = arith.maximumf %88, %87 : vector<1x16x256xf32>
    %90 = vector.broadcast %cst_95 : f32 to vector<1x16x256xf32>
    %91 = arith.minimumf %90, %89 : vector<1x16x256xf32>
    %92 = vector.shape_cast %91 : vector<1x16x256xf32> to vector<16x256xf32>
    %93 = arith.truncf %92 : vector<16x256xf32> to vector<16x256xbf16>
    %c0_96 = arith.constant 0 : index
    %c0_97 = arith.constant 0 : index
    %94 = vector.load %arg6[%c0_96, %c0_97] : memref<256x512xbf16, #tpu.memory_space<vmem>>, vector<256x512xbf16>
    %cst_98 = arith.constant dense<0.000000e+00> : vector<16x512xf32>
    %95 = tpu.matmul %93, %94, %cst_98 {dimension_numbers = #tpu.dot_dimension_numbers<[1], [0], [0], [1], [0, 0, 1, 1], [], []>} : vector<16x256xbf16>, vector<256x512xbf16>, vector<16x512xf32> -> vector<16x512xf32>
    %c0_99 = arith.constant 0 : index
    %c0_100 = arith.constant 0 : index
    %96 = vector.load %arg7[%c0_99, %c0_100] : memref<1x512xf32, #tpu.memory_space<vmem>>, vector<1x512xf32>
    %97 = vector.broadcast %96 : vector<1x512xf32> to vector<16x512xf32>
    %98 = arith.addf %95, %97 : vector<16x512xf32>
    %cst_101 = arith.constant 0.000000e+00 : f32
    %cst_102 = arith.constant 6.000000e+00 : f32
    %99 = vector.broadcast %cst_101 : f32 to vector<16x512xf32>
    %100 = arith.maximumf %99, %98 : vector<16x512xf32>
    %101 = vector.broadcast %cst_102 : f32 to vector<16x512xf32>
    %102 = arith.minimumf %101, %100 : vector<16x512xf32>
    %103 = vector.shape_cast %102 : vector<16x512xf32> to vector<1x16x512xf32>
    %cst_103 = arith.constant dense<0.000000e+00> : vector<1x512xf32>
    %104 = vector.multi_reduction <add>, %103, %cst_103 [1] : vector<1x16x512xf32> to vector<1x512xf32>
    %105 = vector.extract_strided_slice %104 {offsets = [0, 0], sizes = [1, 32], strides = [1, 1]} : vector<1x512xf32> to vector<1x32xf32>
    %106 = vector.extract_strided_slice %104 {offsets = [0, 32], sizes = [1, 32], strides = [1, 1]} : vector<1x512xf32> to vector<1x32xf32>
    %107 = arith.addf %105, %106 : vector<1x32xf32>
    %108 = vector.extract_strided_slice %104 {offsets = [0, 64], sizes = [1, 32], strides = [1, 1]} : vector<1x512xf32> to vector<1x32xf32>
    %109 = arith.addf %107, %108 : vector<1x32xf32>
    %110 = vector.extract_strided_slice %104 {offsets = [0, 96], sizes = [1, 32], strides = [1, 1]} : vector<1x512xf32> to vector<1x32xf32>
    %111 = arith.addf %109, %110 : vector<1x32xf32>
    %112 = vector.extract_strided_slice %104 {offsets = [0, 128], sizes = [1, 32], strides = [1, 1]} : vector<1x512xf32> to vector<1x32xf32>
    %113 = arith.addf %111, %112 : vector<1x32xf32>
    %114 = vector.extract_strided_slice %104 {offsets = [0, 160], sizes = [1, 32], strides = [1, 1]} : vector<1x512xf32> to vector<1x32xf32>
    %115 = arith.addf %113, %114 : vector<1x32xf32>
    %116 = vector.extract_strided_slice %104 {offsets = [0, 192], sizes = [1, 32], strides = [1, 1]} : vector<1x512xf32> to vector<1x32xf32>
    %117 = arith.addf %115, %116 : vector<1x32xf32>
    %118 = vector.extract_strided_slice %104 {offsets = [0, 224], sizes = [1, 32], strides = [1, 1]} : vector<1x512xf32> to vector<1x32xf32>
    %119 = arith.addf %117, %118 : vector<1x32xf32>
    %120 = vector.extract_strided_slice %104 {offsets = [0, 256], sizes = [1, 32], strides = [1, 1]} : vector<1x512xf32> to vector<1x32xf32>
    %121 = arith.addf %119, %120 : vector<1x32xf32>
    %122 = vector.extract_strided_slice %104 {offsets = [0, 288], sizes = [1, 32], strides = [1, 1]} : vector<1x512xf32> to vector<1x32xf32>
    %123 = arith.addf %121, %122 : vector<1x32xf32>
    %124 = vector.extract_strided_slice %104 {offsets = [0, 320], sizes = [1, 32], strides = [1, 1]} : vector<1x512xf32> to vector<1x32xf32>
    %125 = arith.addf %123, %124 : vector<1x32xf32>
    %126 = vector.extract_strided_slice %104 {offsets = [0, 352], sizes = [1, 32], strides = [1, 1]} : vector<1x512xf32> to vector<1x32xf32>
    %127 = arith.addf %125, %126 : vector<1x32xf32>
    %128 = vector.extract_strided_slice %104 {offsets = [0, 384], sizes = [1, 32], strides = [1, 1]} : vector<1x512xf32> to vector<1x32xf32>
    %129 = arith.addf %127, %128 : vector<1x32xf32>
    %130 = vector.extract_strided_slice %104 {offsets = [0, 416], sizes = [1, 32], strides = [1, 1]} : vector<1x512xf32> to vector<1x32xf32>
    %131 = arith.addf %129, %130 : vector<1x32xf32>
    %132 = vector.extract_strided_slice %104 {offsets = [0, 448], sizes = [1, 32], strides = [1, 1]} : vector<1x512xf32> to vector<1x32xf32>
    %133 = arith.addf %131, %132 : vector<1x32xf32>
    %134 = vector.extract_strided_slice %104 {offsets = [0, 480], sizes = [1, 32], strides = [1, 1]} : vector<1x512xf32> to vector<1x32xf32>
    %135 = arith.addf %133, %134 : vector<1x32xf32>
    %cst_104 = arith.constant 3.906250e-03 : f32
    %136 = vector.broadcast %cst_104 : f32 to vector<1x32xf32>
    %137 = arith.mulf %135, %136 : vector<1x32xf32>
    %c0_105 = arith.constant 0 : index
    %c0_106 = arith.constant 0 : index
    %c0_107 = arith.constant 0 : index
    %138 = vector.load %arg8[%c0_105, %c0_106, %c0_107] : memref<1x1x32xf32, #tpu.memory_space<vmem>>, vector<1x1x32xf32>
    %139 = vector.shape_cast %138 : vector<1x1x32xf32> to vector<1x32xf32>
    %140 = vector.shape_cast %137 : vector<1x32xf32> to vector<1x1x32xf32>
    tpu.vector_store %arg8[%c0_105, %c0_106, %c0_107], %140 {strides = array<i32>} : memref<1x1x32xf32, #tpu.memory_space<vmem>>, vector<1x1x32xf32>,
    return
  }
  func.func @transform_0(%arg0: i32) -> (i32, i32, i32) {
    %c0_i32 = arith.constant 0 : i32
    %c0_i32_0 = arith.constant 0 : i32
    %c0_i32_1 = arith.constant 0 : i32
    return %arg0, %c0_i32, %c0_i32_0 : i32, i32, i32
  }
  func.func @transform_1(%arg0: i32) -> (i32, i32, i32) {
    %c0_i32 = arith.constant 0 : i32
    %c0_i32_0 = arith.constant 0 : i32
    %c0_i32_1 = arith.constant 0 : i32
    %c0_i32_2 = arith.constant 0 : i32
    return %c0_i32, %c0_i32_0, %c0_i32_1 : i32, i32, i32
  }
  func.func @transform_2(%arg0: i32) -> (i32, i32) {
    %c0_i32 = arith.constant 0 : i32
    %c0_i32_0 = arith.constant 0 : i32
    %c0_i32_1 = arith.constant 0 : i32
    return %c0_i32, %c0_i32_0 : i32, i32
  }
  func.func @transform_3(%arg0: i32) -> (i32, i32, i32, i32) {
    %c0_i32 = arith.constant 0 : i32
    %c0_i32_0 = arith.constant 0 : i32
    %c0_i32_1 = arith.constant 0 : i32
    %c0_i32_2 = arith.constant 0 : i32
    %c0_i32_3 = arith.constant 0 : i32
    return %c0_i32, %c0_i32_0, %c0_i32_1, %c0_i32_2 : i32, i32, i32, i32
  }
  func.func @transform_4(%arg0: i32) -> (i32, i32, i32) {
    %c0_i32 = arith.constant 0 : i32
    %c0_i32_0 = arith.constant 0 : i32
    %c0_i32_1 = arith.constant 0 : i32
    %c0_i32_2 = arith.constant 0 : i32
    return %c0_i32, %c0_i32_0, %c0_i32_1 : i32, i32, i32
  }
  func.func @transform_5(%arg0: i32) -> (i32, i32) {
    %c0_i32 = arith.constant 0 : i32
    %c0_i32_0 = arith.constant 0 : i32
    %c0_i32_1 = arith.constant 0 : i32
    return %c0_i32, %c0_i32_0 : i32, i32
  }
  func.func @transform_6(%arg0: i32) -> (i32, i32) {
    %c0_i32 = arith.constant 0 : i32
    %c0_i32_0 = arith.constant 0 : i32
    %c0_i32_1 = arith.constant 0 : i32
    return %c0_i32, %c0_i32_0 : i32, i32
  }
  func.func @transform_7(%arg0: i32) -> (i32, i32, i32) {
    %c0_i32 = arith.constant 0 : i32
    %c0_i32_0 = arith.constant 0 : i32
    %c0_i32_1 = arith.constant 0 : i32
    return %arg0, %c0_i32, %c0_i32_0 : i32, i32, i32
  }
}

</mosaic_0001>

<bundles_post_ra>
// kernel: tile.36
= control target key start
LH: loop header
LB: loop body
LE: loop exit
PB: predicated region body
PF: predicated region fallthrough
CT: control target
= control target key end

     0   :  { %s28_s0 = inlined_call_operand.vmem [shape: f32[32], index: 0, kind: input, shape index: {}]   ;;  %s29_s1 = inlined_call_operand.vmem [shape: f32[16,32], index: 1, kind: output, shape index: {}]  }
   0x1   :  { %v4_v0 = vld [vmem:[%s28_s0] ss:$0 sm:$0xff] }
   0x2   :  { %5 = vst [vmem:[%s29_s1] sm:$0xff] %v4_v0 }
   0x3   :  { %8 = vst [vmem:[%s29_s1 + $0x8] sm:$0xff] %v4_v0 }

// kernel: tile.37
= control target key start
LH: loop header
LB: loop body
LE: loop exit
PB: predicated region body
PF: predicated region fallthrough
CT: control target
= control target key end

     0   :  { %s56_s8 = smov 96   ;;  %s57_s11 = smov 32   ;;  %vm3_vm0 = vcmask 261120   ;;  %vm9_vm1 = vcmask 1048320   ;;  %vm15_vm2 = vcmask 785920   ;;  %vm21_vm3 = vcmask 523520   ;;  %s93_s0 = inlined_call_operand.vmem [shape: f32[16,32], index: 0, kind: input, shape index: {}]   ;;  %s94_s1 = inlined_call_operand.vmem [shape: f32[1,512], index: 1, kind: output, shape index: {}]  }
   0x1   :  { %v47_v0 = vld [vmem:[%s93_s0 + $0x3] ss:$4 sm:$0xf]   ;;  %v49_v1 = vld [vmem:[%s93_s0 + $0x1] ss:$4 sm:$0xf]  }
   0x2   :  { %7 = vrot.lane.b32.xlu0 %v47_v0, %s56_s8  ;;  %19 = vrot.lane.b32.xlu1 %v49_v1, %s57_s11  ;;  %v48_v2 = vld [vmem:[%s93_s0 + $0x2] ss:$4 sm:$0xf]   ;;  %s58_s14 = smov 64  }
   0x3   :  { %v2_v3 = vld [vmem:[%s93_s0] ss:$4 sm:$0xf]  }
   0x4   :  { %4 = vst.msk [vmem:[#allocation0] ss:$8 sm:$0xf] %vm3_vm0, %v2_v3  }
   0xa   :  { %13 = vrot.lane.b32.xlu0 %v48_v2, %s58_s14 }
  0x74   :  { %v8_v4 = vpop.permute.xlu0 %7   ;;  %v20_v5 = vpop.permute.xlu1 %19  }
  0x75   :  { %10 = vst.msk [vmem:[#allocation0] ss:$8 sm:$0xf] %vm9_vm1, %v8_v4  }
  0x7c   :  { %v14_v6 = vpop.permute.xlu0 %13  }
  0x7d   :  { %16 = vst.msk [vmem:[#allocation0] ss:$8 sm:$0xf] %vm15_vm2, %v14_v6  }
  0x7e   :  { %22 = vst.msk [vmem:[#allocation0] ss:$8 sm:$0xf] %vm21_vm3, %v20_v5  }
  0x85   :  { %v25_v7 = vld [vmem:[#allocation0] sm:$0x1]  ;;  %v30_v8 = vld [vmem:[#allocation0 + $0x8] sm:$0x1]  ;;  %v36_v9 = vld [vmem:[#allocation0 + $0x10] sm:$0x1] }
  0x86   :  { %28 = vst [vmem:[%s94_s1] sm:$0x1] %v25_v7  ;;  %v42_v10 = vld [vmem:[#allocation0 + $0x18] sm:$0x1] }
  0x87   :  { %50 = vst [vmem:[%s94_s1 + $0x1] sm:$0x1] %v30_v8 }
  0x88   :  { %51 = vst [vmem:[%s94_s1 + $0x2] sm:$0x1] %v36_v9 }
  0x89   :  { %52 = vst [vmem:[%s94_s1 + $0x3] sm:$0x1] %v42_v10 }

// kernel: tile.22
= control target key start
LH: loop header
LB: loop body
LE: loop exit
PB: predicated region body
PF: predicated region fallthrough
CT: control target
= control target key end

     0   :  { %s28_s0 = inlined_call_operand.vmem [shape: f32[16], index: 0, kind: input, shape index: {}]   ;;  %s29_s1 = inlined_call_operand.vmem [shape: f32[16,16], index: 1, kind: output, shape index: {}]  }
   0x1   :  { %v4_v0 = vld [vmem:[%s28_s0] ss:$0 sm:$0xff] }
   0x2   :  { %5 = vst [vmem:[%s29_s1] sm:$0xff] %v4_v0 }
   0x3   :  { %8 = vst [vmem:[%s29_s1 + $0x8] sm:$0xff] %v4_v0 }

// kernel: tile.23
= control target key start
LH: loop header
LB: loop body
LE: loop exit
PB: predicated region body
PF: predicated region fallthrough
CT: control target
= control target key end

     0   :  { %s7_s6 = smov 3  ;;  %s21_s9 = smov 3  ;;  %vm4_vm0 = vcmask 130048   ;;  %vm11_vm1 = vcmask 1048448   ;;  %vm18_vm2 = vcmask 917248   ;;  %vm25_vm3 = vcmask 786048   ;;  %s129_s0 = inlined_call_operand.vmem [shape: f32[16,16], index: 0, kind: input, shape index: {}]   ;;  %s130_s1 = inlined_call_operand.vmem [shape: f32[1,256], index: 1, kind: output, shape index: {}]  }
   0x1   :  { %v67_v0 = vld [vmem:[%s129_s0 + $0x7] ss:$8 sm:%s7_s6]   ;;  %s82_s10 = smov 112   ;;  %v69_v1 = vld [vmem:[%s129_s0 + $0x5] ss:$8 sm:%s21_s9]   ;;  %s83_s13 = smov 80  }
   0x2   :  { %9 = vrot.lane.b32.xlu0 %v67_v0, %s82_s10  ;;  %23 = vrot.lane.b32.xlu1 %v69_v1, %s83_s13  ;;  %s14_s14 = smov 3  ;;  %s28_s15 = smov 3  ;;  %vm32_vm4 = vcmask 654848   ;;  %vm39_vm5 = vcmask 523648   ;;  %vm46_vm6 = vcmask 392448   ;;  %vm53_vm7 = vcmask 261248  }
   0x3   :  { %s35_s16 = smov 3  ;;  %v68_v3 = vld [vmem:[%s129_s0 + $0x6] ss:$8 sm:%s14_s14]   ;;  %s84_s21 = smov 48   ;;  %v70_v4 = vld [vmem:[%s129_s0 + $0x4] ss:$8 sm:%s28_s15]  }
   0x4   :  { %v71_v2 = vld [vmem:[%s129_s0 + $0x3] ss:$8 sm:%s35_s16]   ;;  %s42_s24 = smov 3  ;;  %s85_s25 = smov 96  }
   0x5   :  { %37 = vrot.lane.b32.xlu2 %v71_v2, %s84_s21  ;;  %s86_s26 = smov 64   ;;  %s49_s27 = smov 3  ;;  %v72_v5 = vld [vmem:[%s129_s0 + $0x2] ss:$8 sm:%s42_s24]  }
   0x6   :  { %v73_v6 = vld [vmem:[%s129_s0 + $0x1] ss:$8 sm:%s49_s27]   ;;  %s87_s3 = smov 32   ;;  %s88_s4 = smov 16  }
   0x7   :  { %s2_s5 = smov 3 }
   0x8   :  { %v3_v7 = vld [vmem:[%s129_s0] ss:$8 sm:%s2_s5]  }
   0x9   :  { %5 = vst.msk [vmem:[#allocation0] ss:$8 sm:$0x3] %vm4_vm0, %v3_v7  }
   0xa   :  { %16 = vrot.lane.b32.xlu0 %v68_v3, %s85_s25  ;;  %30 = vrot.lane.b32.xlu1 %v70_v4, %s86_s26 }
   0xd   :  { %44 = vrot.lane.b32.xlu2 %v72_v5, %s87_s3 }
  0x12   :  { %51 = vrot.lane.b32.xlu0 %v73_v6, %s88_s4 }
  0x5f   :  { %v38_v8 = vpop.permute.xlu2 %37  }
  0x67   :  { %v45_v9 = vpop.permute.xlu2 %44  }
  0x74   :  { %v10_v10 = vpop.permute.xlu0 %9   ;;  %v24_v11 = vpop.permute.xlu1 %23  }
  0x75   :  { %12 = vst.msk [vmem:[#allocation0] ss:$8 sm:$0x3] %vm11_vm1, %v10_v10  }
  0x7c   :  { %v17_v12 = vpop.permute.xlu0 %16   ;;  %v31_v13 = vpop.permute.xlu1 %30  }
  0x7d   :  { %19 = vst.msk [vmem:[#allocation0] ss:$8 sm:$0x3] %vm18_vm2, %v17_v12  }
  0x7e   :  { %26 = vst.msk [vmem:[#allocation0] ss:$8 sm:$0x3] %vm25_vm3, %v24_v11  }
  0x7f   :  { %33 = vst.msk [vmem:[#allocation0] ss:$8 sm:$0x3] %vm32_vm4, %v31_v13  }
  0x80   :  { %40 = vst.msk [vmem:[#allocation0] ss:$8 sm:$0x3] %vm39_vm5, %v38_v8  }
  0x81   :  { %47 = vst.msk [vmem:[#allocation0] ss:$8 sm:$0x3] %vm46_vm6, %v45_v9  }
  0x84   :  { %v52_v14 = vpop.permute.xlu0 %51  }
  0x85   :  { %54 = vst.msk [vmem:[#allocation0] ss:$8 sm:$0x3] %vm53_vm7, %v52_v14  }
  0x8c   :  { %v57_v15 = vld [vmem:[#allocation0] sm:$0x1]  ;;  %v62_v16 = vld [vmem:[#allocation0 + $0x8] sm:$0x1] }
  0x8d   :  { %60 = vst [vmem:[%s130_s1] sm:$0x1] %v57_v15 }
  0x8e   :  { %74 = vst [vmem:[%s130_s1 + $0x1] sm:$0x1] %v62_v16 }

// kernel: tile.32
= control target key start
LH: loop header
LB: loop body
LE: loop exit
PB: predicated region body
PF: predicated region fallthrough
CT: control target
= control target key end

     0   :  { %s7_s6 = smov 3  ;;  %s21_s9 = smov 3  ;;  %vm4_vm0 = vcmask 130048   ;;  %vm11_vm1 = vcmask 1048448   ;;  %vm18_vm2 = vcmask 917248   ;;  %vm25_vm3 = vcmask 786048   ;;  %s129_s0 = inlined_call_operand.vmem [shape: f32[16,16], index: 0, kind: input, shape index: {}]   ;;  %s130_s1 = inlined_call_operand.vmem [shape: f32[1,1,256], index: 1, kind: output, shape index: {}]  }
   0x1   :  { %v67_v0 = vld [vmem:[%s129_s0 + $0x7] ss:$8 sm:%s7_s6]   ;;  %s82_s10 = smov 112   ;;  %v69_v1 = vld [vmem:[%s129_s0 + $0x5] ss:$8 sm:%s21_s9]   ;;  %s83_s13 = smov 80  }
   0x2   :  { %9 = vrot.lane.b32.xlu0 %v67_v0, %s82_s10  ;;  %23 = vrot.lane.b32.xlu1 %v69_v1, %s83_s13  ;;  %s14_s14 = smov 3  ;;  %s28_s15 = smov 3  ;;  %vm32_vm4 = vcmask 654848   ;;  %vm39_vm5 = vcmask 523648   ;;  %vm46_vm6 = vcmask 392448   ;;  %vm53_vm7 = vcmask 261248  }
   0x3   :  { %s35_s16 = smov 3  ;;  %v68_v3 = vld [vmem:[%s129_s0 + $0x6] ss:$8 sm:%s14_s14]   ;;  %s84_s21 = smov 48   ;;  %v70_v4 = vld [vmem:[%s129_s0 + $0x4] ss:$8 sm:%s28_s15]  }
   0x4   :  { %v71_v2 = vld [vmem:[%s129_s0 + $0x3] ss:$8 sm:%s35_s16]   ;;  %s42_s24 = smov 3  ;;  %s85_s25 = smov 96  }
   0x5   :  { %37 = vrot.lane.b32.xlu2 %v71_v2, %s84_s21  ;;  %s86_s26 = smov 64   ;;  %s49_s27 = smov 3  ;;  %v72_v5 = vld [vmem:[%s129_s0 + $0x2] ss:$8 sm:%s42_s24]  }
   0x6   :  { %v73_v6 = vld [vmem:[%s129_s0 + $0x1] ss:$8 sm:%s49_s27]   ;;  %s87_s3 = smov 32   ;;  %s88_s4 = smov 16  }
   0x7   :  { %s2_s5 = smov 3 }
   0x8   :  { %v3_v7 = vld [vmem:[%s129_s0] ss:$8 sm:%s2_s5]  }
   0x9   :  { %5 = vst.msk [vmem:[#allocation0] ss:$8 sm:$0x3] %vm4_vm0, %v3_v7  }
   0xa   :  { %16 = vrot.lane.b32.xlu0 %v68_v3, %s85_s25  ;;  %30 = vrot.lane.b32.xlu1 %v70_v4, %s86_s26 }
   0xd   :  { %44 = vrot.lane.b32.xlu2 %v72_v5, %s87_s3 }
  0x12   :  { %51 = vrot.lane.b32.xlu0 %v73_v6, %s88_s4 }
  0x5f   :  { %v38_v8 = vpop.permute.xlu2 %37  }
  0x67   :  { %v45_v9 = vpop.permute.xlu2 %44  }
  0x74   :  { %v10_v10 = vpop.permute.xlu0 %9   ;;  %v24_v11 = vpop.permute.xlu1 %23  }
  0x75   :  { %12 = vst.msk [vmem:[#allocation0] ss:$8 sm:$0x3] %vm11_vm1, %v10_v10  }
  0x7c   :  { %v17_v12 = vpop.permute.xlu0 %16   ;;  %v31_v13 = vpop.permute.xlu1 %30  }
  0x7d   :  { %19 = vst.msk [vmem:[#allocation0] ss:$8 sm:$0x3] %vm18_vm2, %v17_v12  }
  0x7e   :  { %26 = vst.msk [vmem:[#allocation0] ss:$8 sm:$0x3] %vm25_vm3, %v24_v11  }
  0x7f   :  { %33 = vst.msk [vmem:[#allocation0] ss:$8 sm:$0x3] %vm32_vm4, %v31_v13  }
  0x80   :  { %40 = vst.msk [vmem:[#allocation0] ss:$8 sm:$0x3] %vm39_vm5, %v38_v8  }
  0x81   :  { %47 = vst.msk [vmem:[#allocation0] ss:$8 sm:$0x3] %vm46_vm6, %v45_v9  }
  0x84   :  { %v52_v14 = vpop.permute.xlu0 %51  }
  0x85   :  { %54 = vst.msk [vmem:[#allocation0] ss:$8 sm:$0x3] %vm53_vm7, %v52_v14  }
  0x8c   :  { %v57_v15 = vld [vmem:[#allocation0] sm:$0x1]  ;;  %v62_v16 = vld [vmem:[#allocation0 + $0x8] sm:$0x1] }
  0x8d   :  { %60 = vst [vmem:[%s130_s1] sm:$0x1] %v57_v15 }
  0x8e   :  { %74 = vst [vmem:[%s130_s1 + $0x1] sm:$0x1] %v62_v16 }

// kernel: net_forward_pallas.1
= control target key start
LH: loop header
LB: loop body
LE: loop exit
PB: predicated region body
PF: predicated region fallthrough
CT: control target
= control target key end

     0   :  { %12 = vsyncpa [#allocation4], 0  ;;  %s3562_s0 = inlined_call_operand.vmem [shape: bf16[2,18,72], index: 0, kind: input, shape index: {}]   ;;  %s3563_s1 = inlined_call_operand.vmem [shape: bf16[3,72,256], index: 1, kind: input, shape index: {}]   ;;  %s3564_s2 = inlined_call_operand.vmem [shape: f32[1,256], index: 2, kind: input, shape index: {}]   ;;  %s3565_s3 = inlined_call_operand.vmem [shape: f32[9,1,1,256], index: 3, kind: input, shape index: {}]   ;;  %s3566_s4 = inlined_call_operand.vmem [shape: f32[1,1,256], index: 4, kind: input, shape index: {}]   ;;  %s3567_s5 = inlined_call_operand.vmem [shape: bf16[256,512], index: 5, kind: input, shape index: {}]   ;;  %s3568_s6 = inlined_call_operand.vmem [shape: f32[1,512], index: 6, kind: input, shape index: {}]   ;;  %s3569_s7 = inlined_call_operand.hbm [shape: f32[2,1,32], index: 7, kind: output, shape index: {}]  }
   0x1   :  { %14 = vsyncpa [#allocation4 + $0x1], 0  ;;  %s2498_s24 = smov 0   ;;  %s2500_s25 = smov 0  }
   0x2   :  { %s2502_s26 = smov 0   ;;  %s2504_s27 = smov 0  }
   0x3 LB: > { %s2519_s28 = sadd.s32 4294967295, %s2450_s27   ;;  %s1856_s29 = sadd.s32 4294967294, %s2450_s27   ;;  %s2450_s27 = sphi %s2504_s27, %s3575_s27   ;;  %s2446_s26 = sphi %s2502_s26, %s3574_s26   ;;  %s2442_s25 = sphi %s2500_s25, %s3573_s25   ;;  %s2438_s24 = sphi %s2498_s24, %s3572_s24  }
   0x4   : > { %s2523_s30 = sadd.s32 1, %s2450_s27   ;;  %s179_s8 = sadd.s32 1, %s2446_s26 }
   0x5   : > { %s176_s9 = ssub.s32 %s2450_s27, %s2523_s30  ;;  %p189_p0 = scmp.ne.s32.totalorder %s2446_s26, %s2442_s25 }
   0x6   : > { %p177_p1 = scmp.eq.s32.totalorder %s176_s9, 0  ;;  %p190_p2 = scmp.eq.s32.totalorder %s2519_s28, 1 }
   0x7   : > { %p195_p3 = scmp.ne.s32.totalorder %s2442_s25, %s2438_s24  ;;  %p196_p4 = scmp.eq.s32.totalorder %s1856_s29, 1 }
   0x8   : > { %s2534_s10 = scalar_select %p177_p1, %s2446_s26, %s179_s8  }
   0x9   : > { %p2536_p5 = por %p190_p2, %p189_p0  ;;  %p2540_p6 = por %p196_p4, %p195_p3 }
   0xa   : > { %p1859_p7 = scmp.ge.s32.totalorder %s2450_s27, 1  ;;  %p240_p8 = scmp.lt.s32.totalorder %s2450_s27, 3 }
   0xc   : > { %p241_p9 = pnand %p1859_p7, %p240_p8 }
   0xd   : > { %p271_p10 = scmp.lt.s32.totalorder (!%p241_p9), %s2519_s28, 1  ;;  %s2452_s23 = smov (!%p241_p9), 16  }
   0xe   : > { %244 = sbr.rel (%p241_p9) target bundleno = 858 (0x35a), region = 48  ;;  %s2453_s19 = smov (!%p241_p9), 32  }
   0xf   : > { %s2457_s17 = smov (!%p241_p9), 64   ;;  %s1797_s20 = scalar_lea.hbm (!%p241_p9), %s3569_s7, %s2519_s28 }
  0x10   : > { %s1801_s29 = sshll.u32 (!%p241_p9), %s1797_s20, 4  ;;  %s2408_s14 = scalar_lea.hbm (!%p241_p9), %s3569_s7, 2  ;;  %s1802_s29 = int_to_ptr.hbm [resolvable:$true] %s1801_s29 }
  0x11   : > { %s2402_s9 = sshra.s32 (!%p241_p9), %s1802_s29, 4  ;;  %s2403_s9 = int_to_ptr.hbm [resolvable:$true] %s2402_s9 }
  0x12   : > { %s2404_s13 = scalar_lea.hbm (!%p241_p9), %s2403_s9, 1  ;;  %p2409_p0 = scmp.lt.s32.totalorder (!%p241_p9), %s2403_s9, %s3569_s7 }
  0x13   : > { %v1869_v0 = vld [vmem:[%s3563_s1 + $0x88] sm:$0xff]  ;;  %v287_v1 = vld [vmem:[%s3563_s1 + $0x40] sm:$0xff]  ;;  %vm369_vm0 = vcmask 1043456   ;;  %v1896_v6 = vld [vmem:[%s3563_s1 + $0x78] sm:$0xf]  ;;  %s272_s8 = scalar_select %p271_p10, %s2519_s28, 1 }
  0x14   : > { %v345_v2 = vunpack.c.l.b16 %v1869_v0  ;;  %v346_v3 = vunpack.c.h.b16 %v1869_v0  ;;  %v429_v4 = vunpack.c.l.b16 %v287_v1  ;;  %v430_v5 = vunpack.c.h.b16 %v287_v1  ;;  %v2262_v7 = vld [vmem:[%s3563_s1 + $0x7c] sm:$0xf0]  ;;  %v2261_v12 = vld [vmem:[%s3563_s1 + $0x7c] sm:$0xf]  ;;  %v1898_v13 = vld [vmem:[%s3563_s1 + $0x80] sm:$0xf0]  ;;  %p2405_p11 = scmp.ne.s32.totalorder %s2403_s9, %s2404_s13  ;;  %p2410_p1 = scmp.lt.s32.totalorder %s2408_s14, %s2404_s13 }
  0x15   : > { %v1930_v14 = vld [vmem:[%s3563_s1 + $0x30] sm:$0xf]  ;;  %v2254_v15 = vld [vmem:[%s3563_s1 + $0x34] sm:$0xf0]  ;;  %v2253_v16 = vld [vmem:[%s3563_s1 + $0x34] sm:$0xf]  ;;  %v1897_v22 = vor.u32 %v2262_v7, %v1896_v6  ;;  %v1901_v23 = vor.u32 %v2261_v12, %v1898_v13 }
  0x16   : > { %v355_v8 = vpack.c.b16 %v345_v2, %v345_v2  ;;  %v356_v9 = vpack.c.b16 %v346_v3, %v346_v3  ;;  %v439_v10 = vpack.c.b16 %v429_v4, %v429_v4  ;;  %v440_v11 = vpack.c.b16 %v430_v5, %v430_v5  ;;  %v1932_v17 = vld [vmem:[%s3563_s1 + $0x38] sm:$0xf0]  ;;  %v1888_v24 = vld [vmem:[%s3563_s1 + $0x68] sm:$0xf]  ;;  %v2260_v25 = vld [vmem:[%s3563_s1 + $0x6c] sm:$0xf0]  ;;  %p2406_p12 = pnand %p2405_p11, %p2536_p5  ;;  %p2411_p2 = por %p2410_p1, %p2409_p0 }
  0x17   : > { %v1931_v26 = vor.u32 %v2254_v15, %v1930_v14  ;;  %v1935_v27 = vor.u32 %v2253_v16, %v1932_v17  ;;  %v2259_v28 = vld [vmem:[%s3563_s1 + $0x6c] sm:$0xf]  ;;  %v1890_v29 = vld [vmem:[%s3563_s1 + $0x70] sm:$0xf0]  ;;  %v1922_v30 = vld [vmem:[%s3563_s1 + $0x20] sm:$0xf]  ;;  %v1889_v34 = vor.u32 %v2260_v25, %v1888_v24 }
  0x18   : > { %v371_v18 = vsel %vm369_vm0, %v355_v8, 0  ;;  %v374_v19 = vsel %vm369_vm0, %v356_v9, 0  ;;  %v452_v20 = vsel %vm369_vm0, %v439_v10, 0  ;;  %v455_v21 = vsel %vm369_vm0, %v440_v11, 0  ;;  %v2252_v31 = vld [vmem:[%s3563_s1 + $0x24] sm:$0xf0]  ;;  %p2407_p13 = pneg %p2406_p12 }
  0x19   : > { %379 = vmatpush.bf16.msra.mxu0 %v371_v18  ;;  %393 = vmatpush.bf16.msra.mxu1 %v374_v19  ;;  %v2251_v32 = vld [vmem:[%s3563_s1 + $0x24] sm:$0xf]  ;;  %v1924_v33 = vld [vmem:[%s3563_s1 + $0x28] sm:$0xf0]  ;;  %v1893_v35 = vor.u32 %v2259_v28, %v1890_v29  ;;  %v1880_v36 = vld [vmem:[%s3563_s1 + $0x58] sm:$0xf]  ;;  %v1923_v39 = vor.u32 %v2252_v31, %v1922_v30 }
  0x1a   : > { %460 = vmatpush.bf16.msra.mxu2 %v452_v20  ;;  %474 = vmatpush.bf16.msra.mxu3 %v455_v21  ;;  %v2258_v37 = vld [vmem:[%s3563_s1 + $0x5c] sm:$0xf0]  ;;  %v2257_v38 = vld [vmem:[%s3563_s1 + $0x5c] sm:$0xf]  ;;  %v1927_v40 = vor.u32 %v2251_v32, %v1924_v33  ;;  %v1882_v41 = vld [vmem:[%s3563_s1 + $0x60] sm:$0xf0]  ;;  %p2412_p3 = pnand %p2411_p2, %p2407_p13 }
  0x1b   : > { %v1914_v42 = vld [vmem:[%s3563_s1 + $0x10] sm:$0xf]  ;;  %v2250_v43 = vld [vmem:[%s3563_s1 + $0x14] sm:$0xf0]  ;;  %v2249_v44 = vld [vmem:[%s3563_s1 + $0x14] sm:$0xf]  ;;  %v1881_v49 = vor.u32 %v2258_v37, %v1880_v36  ;;  %v1885_v50 = vor.u32 %v2257_v38, %v1882_v41 }
  0x1c   : > { %v1916_v45 = vld [vmem:[%s3563_s1 + $0x18] sm:$0xf0]  ;;  %v1946_v46 = vld [vmem:[%s3563_s1 + $0xd0] sm:$0xff]  ;;  %v1872_v51 = vld [vmem:[%s3563_s1 + $0x48] sm:$0xf]  ;;  %s2342_s16 = smul.u32 12, %s272_s8  ;;  %v1915_v53 = vor.u32 %v2250_v43, %v1914_v42 }
  0x1d   : > { %380 = vmatpush.bf16.msra.mxu0 %v1897_v22  ;;  %394 = vmatpush.bf16.msra.mxu1 %v1901_v23  ;;  %v528_v47 = vunpack.c.l.b16 %v1946_v46  ;;  %v529_v48 = vunpack.c.h.b16 %v1946_v46  ;;  %v2256_v52 = vld [vmem:[%s3563_s1 + $0x4c] sm:$0xf0]  ;;  %v1919_v54 = vor.u32 %v2249_v44, %v1916_v45  ;;  %v2255_v55 = vld [vmem:[%s3563_s1 + $0x4c] sm:$0xf]  ;;  %v1874_v56 = vld [vmem:[%s3563_s1 + $0x50] sm:$0xf0] }
  0x1e   : > { %461 = vmatpush.bf16.msra.mxu2 %v1931_v26  ;;  %475 = vmatpush.bf16.msra.mxu3 %v1935_v27  ;;  %v1906_v57 = vld [vmem:[%s3563_s1] sm:$0xf]  ;;  %v2248_v58 = vld [vmem:[%s3563_s1 + $0x4] sm:$0xf0]  ;;  %v2247_v59 = vld [vmem:[%s3563_s1 + $0x4] sm:$0xf]  ;;  %s2662_s18 = scalar_lea.vmem %s3562_s0, %s2342_s16  ;;  %v1873_v61 = vor.u32 %v2256_v52, %v1872_v51  ;;  %v1877_v2 = vor.u32 %v2255_v55, %v1874_v56 }
  0x1f   : > { %v1908_v60 = vld [vmem:[%s3563_s1 + $0x8] sm:$0xf0]  ;;  %v538_v62 = vpack.c.b16 %v528_v47, %v528_v47  ;;  %v539_v63 = vpack.c.b16 %v529_v48, %v529_v48  ;;  %v2336_v0 = vld [vmem:[%s2662_s18] sm:$0xff]   ;;  %v288_v1 = vld [vmem:[%s2662_s18 + $0x8] sm:$0x1]  ;;  %v1907_v6 = vor.u32 %v2248_v58, %v1906_v57  ;;  %vm365_vm2 = vcmask 588800  }
  0x20   : > { %v304_v3 = vunpack.c.l.b16 %v288_v1  ;;  %v309_v4 = vshrl.u32 %v2336_v0, 16  ;;  %v311_v5 = vshll.u32 %v2336_v0, 16  ;;  %v1911_v7 = vor.u32 %v2247_v59, %v1908_v60  ;;  %v1973_v8 = vld [vmem:[%s3563_s1 + $0xc0] sm:$0xf]  ;;  %v2270_v11 = vld [vmem:[%s3563_s1 + $0xc4] sm:$0xf0] }
  0x21   : > { %381 = vmatpush.bf16.msra.mxu0 %v1889_v34  ;;  %395 = vmatpush.bf16.msra.mxu1 %v1893_v35  ;;  %v2269_v12 = vld [vmem:[%s3563_s1 + $0xc4] sm:$0xf]  ;;  %v552_v13 = vsel %vm369_vm0, %v538_v62, 0  ;;  %v555_v14 = vsel %vm369_vm0, %v539_v63, 0  ;;  %v1975_v15 = vld [vmem:[%s3563_s1 + $0xc8] sm:$0xf0]  ;;  %v1974_v22 = vor.u32 %v2270_v11, %v1973_v8 }
  0x22   : > { %462 = vmatpush.bf16.msra.mxu2 %v1923_v39  ;;  %476 = vmatpush.bf16.msra.mxu3 %v1927_v40  ;;  %v2669_v9 = vpack.c.b16 %v304_v3, %v304_v3  ;;  %v313_v10 = vrot.slane %v311_v5, 1  ;;  %v1981_v16 = vld [vmem:[%s3565_s3 + $0x2] sm:$0x3]  ;;  %vm307_vm1 = vsmask.f32 7424  ;;  %v1978_v23 = vor.u32 %v2269_v12, %v1975_v15 }
  0x23   : > { %v695_v19 = vperm.slane %v1981_v16, 1  ;;  %v694_v20 = vperm.slane %v1981_v16, 0  ;;  %v1965_v24 = vld [vmem:[%s3563_s1 + $0xb0] sm:$0xf]  ;;  %v2268_v25 = vld [vmem:[%s3563_s1 + $0xb4] sm:$0xf0] }
  0x24   : > { %v314_v17 = vor.u32 %v313_v10, %v309_v4  ;;  %v316_v18 = vshll.u32 %v2669_v9, 16  ;;  %v2267_v26 = vld [vmem:[%s3563_s1 + $0xb4] sm:$0xf]  ;;  %v1967_v27 = vld [vmem:[%s3563_s1 + $0xb8] sm:$0xf0]  ;;  %v1966_v29 = vor.u32 %v2268_v25, %v1965_v24  ;;  %v501_v47 = vrot.slane %v2669_v9, 1 }
  0x25   : > { %382 = vmatpush.bf16.msra.mxu0 %v1881_v49  ;;  %396 = vmatpush.bf16.msra.mxu1 %v1885_v50  ;;  %v1970_v30 = vor.u32 %v2267_v26, %v1967_v27  ;;  %v1957_v31 = vld [vmem:[%s3563_s1 + $0xa0] sm:$0xf]  ;;  %v2266_v32 = vld [vmem:[%s3563_s1 + $0xa4] sm:$0xf0]  ;;  %v2265_v33 = vld [vmem:[%s3563_s1 + $0xa4] sm:$0xf] }
  0x26   : > { %463 = vmatpush.bf16.msra.mxu2 %v1915_v53  ;;  %477 = vmatpush.bf16.msra.mxu3 %v1919_v54  ;;  %v318_v21 = vrot.slane %v316_v18, 1  ;;  %v1959_v34 = vld [vmem:[%s3563_s1 + $0xa8] sm:$0xf0]  ;;  %v2339_v35 = vld [vmem:[%s2662_s18] sm:$0xf0]  ;;  %v1958_v37 = vor.u32 %v2266_v32, %v1957_v31  ;;  %vm499_vm3 = vcmask 1046528  }
  0x27   : > { %698 = vrot.lane.b32.xlu1 %v695_v19, %s2452_s23  ;;  %696 = vrot.lane.b32.xlu0 %v694_v20, %s2452_s23  ;;  %v2340_v36 = vld [vmem:[%s2662_s18] sm:$0xe]  ;;  %v1962_v38 = vor.u32 %v2265_v33, %v1959_v34  ;;  %v1949_v39 = vld [vmem:[%s3563_s1 + $0x90] sm:$0xf]  ;;  %vm630_vm4 = vcmask 1040384   ;;  %vm616_vm5 = vcmask 130048  }
  0x28   : > { %v319_v28 = vsel %vm307_vm1, %v314_v17, %v318_v21  ;;  %v2341_v40 = vor.u32 %v2340_v36, %v2339_v35  ;;  %v2264_v41 = vld [vmem:[%s3563_s1 + $0x94] sm:$0xf0]  ;;  %v2263_v42 = vld [vmem:[%s3563_s1 + $0x94] sm:$0xf]  ;;  %v1951_v43 = vld [vmem:[%s3563_s1 + $0x98] sm:$0xf0] }
  0x29   : > { %383 = vmatpush.bf16.msra.mxu0 %v1873_v61  ;;  %397 = vmatpush.bf16.msra.mxu1 %v1877_v2  ;;  %v1950_v44 = vor.u32 %v2264_v41, %v1949_v39  ;;  %v1954_v45 = vor.u32 %v2263_v42, %v1951_v43  ;;  %v1982_v49 = vld [vmem:[%s3565_s3 + $0x4] sm:$0x3]  ;;  %v1984_v50 = vld [vmem:[%s3565_s3 + $0x8] sm:$0x3]  ;;  %v1985_v55 = vld [vmem:[%s3565_s3 + $0xa] sm:$0x3]  ;;  %v607_v41 = vlaneseq }
  0x2a   : > { %464 = vmatpush.bf16.msra.mxu2 %v1907_v6  ;;  %478 = vmatpush.bf16.msra.mxu3 %v1911_v7  ;;  %v500_v46 = vrot.slane %v2341_v40, 1  ;;  %v744_v51 = vperm.slane %v1982_v49, 0  ;;  %v745_v52 = vperm.slane %v1982_v49, 1  ;;  %v839_v53 = vperm.slane %v1984_v50, 0  ;;  %v1987_v58 = vld [vmem:[%s3565_s3 + $0xe] sm:$0x3] }
  0x2b   : > { %v840_v54 = vperm.slane %v1984_v50, 1  ;;  %v910_v56 = vperm.slane %v1985_v55, 1  ;;  %v909_v57 = vperm.slane %v1985_v55, 0  ;;  %v1988_v59 = vld [vmem:[%s3565_s3 + $0x10] sm:$0x3]  ;;  %v1023_v60 = vperm.slane %v1987_v58, 0 }
  0x2c   : > { %1902 = vmatmul.msk.bf16.vlgmr.msra.gmra.mxu0 %vm365_vm2, %v319_v28  ;;  %1903 = vmatmul.msk.bf16.vlgmr.msra.gmra.mxu1 %vm365_vm2, %v319_v28  ;;  %v502_v48 = vsel %vm499_vm3, %v500_v46, %v501_v47  ;;  %v1093_v61 = vperm.slane %v1988_v59, 0  ;;  %v1024_v62 = vperm.slane %v1987_v58, 1  ;;  %v1094_v63 = vperm.slane %v1988_v59, 1  ;;  %v589_v6 = vld [vmem:[%s3564_s2] sm:$0x3]  ;;  %s2456_s18 = smov 96  }
  0x2d   : > { %560 = vmatpush.bf16.msrb.mxu0 %v552_v13  ;;  %574 = vmatpush.bf16.msrb.mxu1 %v555_v14  ;;  %v591_v9 = vperm.slane %v589_v6, 0  ;;  %v592_v14 = vperm.slane %v589_v6, 1  ;;  %vm619_vm6 = vcmask 123904   ;;  %v2454_v42 = vmov 0.0  }
  0x2e   : > { %1936 = vmatmul.msk.bf16.vlgmr.msra.gmra.mxu2 %vm365_vm2, %v2336_v0  ;;  %1937 = vmatmul.msk.bf16.vlgmr.msra.gmra.mxu3 %vm365_vm2, %v2336_v0  ;;  %618 = vst.msk [vmem:[#allocation2 + $0x18] sm:$0xff] %vm616_vm5, %v2454_v42  ;;  %vm609_vm7 = vcmp.lt.s32.totalorder %v607_v41, 288  ;;  %vm624_vm8 = vcmask 255104   ;;  %vm621_vm9 = vcmask 261248   ;;  %vm670_vm10 = vcmask 1040512  }
  0x2f   : > { %746 = vrot.lane.b32.xlu2 %v744_v51, %s2453_s19  ;;  %841 = vrot.lane.b32.xlu1 %v839_v53, %s2452_s23  ;;  %614 = vst.msk [vmem:[#allocation2 + $0x31] ss:$8 sm:$0x7] %vm609_vm7, %v2454_v42  ;;  %vm673_vm11 = vcmask 122880   ;;  %vm661_vm12 = vcmask 1047681   ;;  %vm664_vm13 = vcmask 130049  }
  0x30   : > { %748 = vrot.lane.b32.xlu0 %v745_v52, %s2453_s19  ;;  %620 = vst.msk [vmem:[#allocation2 + $0x30] sm:$0x3] %vm619_vm6, %v2454_v42  ;;  %vm666_vm14 = vcmask 1047680   ;;  %vm750_vm15 = vcmask 261120   ;;  %vm999_vm0 = vcmask 1045504   ;;  %vm728_vm1 = vcmask 916480  }
  0x31   : > { %561 = vmatpush.bf16.msrb.mxu0 %v1974_v22  ;;  %575 = vmatpush.bf16.msrb.mxu1 %v1978_v23  ;;  %611 = vst.msk [vmem:[#allocation2] ss:$8 sm:$0x7] %vm609_vm7, %v2454_v42 }
  0x32   : > { %617 = vst.msk [vmem:[#allocation2] sm:$0xff] %vm616_vm5, %v2454_v42 }
  0x33   : > { %625 = vst.msk [vmem:[#allocation2 + $0x40] sm:$0x3] %vm624_vm8, %v2454_v42 }
  0x34   : > { %622 = vst.msk [vmem:[#allocation2 + $0x10] sm:$0xff] %vm621_vm9, %v2454_v42 }
  0x35   : > { %562 = vmatpush.bf16.msrb.mxu0 %v1966_v29  ;;  %576 = vmatpush.bf16.msrb.mxu1 %v1970_v30  ;;  %623 = vst.msk [vmem:[#allocation2 + $0x28] sm:$0xff] %vm621_vm9, %v2454_v42 }
  0x37   : > { %843 = vrot.lane.b32.xlu2 %v840_v54, %s2452_s23  ;;  %913 = vrot.lane.b32.xlu1 %v910_v56, %s2453_s19 }
  0x38   : > { %911 = vrot.lane.b32.xlu0 %v909_v57, %s2453_s19 }
  0x39   : > { %563 = vmatpush.bf16.msrb.mxu0 %v1958_v37  ;;  %577 = vmatpush.bf16.msrb.mxu1 %v1962_v38 }
  0x3d   : > { %564 = vmatpush.bf16.msrb.mxu0 %v1950_v44  ;;  %578 = vmatpush.bf16.msrb.mxu1 %v1954_v45 }
  0x3f   : > { %1025 = vrot.lane.b32.xlu2 %v1023_v60, %s2452_s23  ;;  %1095 = vrot.lane.b32.xlu1 %v1093_v61, %s2453_s19 }
  0x40   : > { %1979 = vmatmul.msk.bf16.vlgmr.msrb.gmra.mxu0 %vm365_vm2, %v502_v48  ;;  %1980 = vmatmul.msk.bf16.vlgmr.msrb.gmra.mxu1 %vm365_vm2, %v502_v48  ;;  %vm779_vm2 = vcmask 785408  }
  0x41   : > { %1027 = vrot.lane.b32.xlu0 %v1024_v62, %s2452_s23 }
  0x47   : > { %1097 = vrot.lane.b32.xlu2 %v1094_v63, %s2453_s19 }
  0x89   : > { %v2770_v43 = vpop.permute.xlu2 %746 }
  0x91   : > { %v2772_v44 = vpop.permute.xlu2 %843 }
  0x99   : > { %v697_v45 = vpop.permute.xlu0 %696  ;;  %v2774_v46 = vpop.permute.xlu2 %1025 }
  0x9a   : > { %v699_v48 = vpop.permute.xlu1 %698 }
  0xa1   : > { %v2778_v49 = vpop.permute.xlu2 %1097 }
  0xa2   : > { %v2776_v47 = vpop.permute.xlu0 %748  ;;  %v2782_v51 = vpop.permute.xlu1 %841 }
  0xa9   : > { %v385_v0 = vpop.f32.mrf.mxu0  ;;  %v399_v1 = vpop.f32.mrf.mxu1 }
  0xaa   : > { %v2780_v50 = vpop.permute.xlu0 %911  ;;  %v2786_v54 = vpop.permute.xlu1 %913 }
  0xb1   : > { %v387_v2 = vpop.f32.mrf.mxu0  ;;  %v401_v3 = vpop.f32.mrf.mxu1 }
  0xb2   : > { %v466_v4 = vpop.f32.mrf.mxu2  ;;  %v480_v5 = vpop.f32.mrf.mxu3 }
  0xb3   : > { %v467_v7 = vadd.f32 %v466_v4, %v385_v0  ;;  %v481_v8 = vadd.f32 %v480_v5, %v399_v1  ;;  %v2784_v53 = vpop.permute.xlu0 %1027  ;;  %v2789_v58 = vpop.permute.xlu1 %1095 }
  0xba   : > { %v468_v16 = vpop.f32.mrf.mxu2  ;;  %v482_v17 = vpop.f32.mrf.mxu3 }
  0xbb   : > { %v469_v20 = vadd.f32 %v468_v16, %v387_v2  ;;  %v483_v21 = vadd.f32 %v482_v17, %v401_v3 }
  0xbd   : > { %v566_v10 = vpop.f32.mrf.mxu0  ;;  %v580_v11 = vpop.f32.mrf.mxu1 }
  0xbe   : > { %v585_v12 = vadd.f32 %v566_v10, %v467_v7  ;;  %v586_v13 = vadd.f32 %v580_v11, %v481_v8  ;;  %v1983_v7 = vld [vmem:[%s3565_s3 + $0x6] sm:$0x3]  ;;  %v700_v11 = vsel %vm616_vm5, %v697_v45, %v699_v48 }
  0xbf   : > { %v799_v8 = vperm.slane %v1983_v7, 0 }
  0xc0   : > { %v595_v15 = vadd.f32 %v591_v9, %v585_v12  ;;  %v596_v19 = vadd.f32 %v592_v14, %v586_v13  ;;  %v1099_v12 = vsel %vm750_vm15, %v2789_v58, %v2778_v49 }
  0xc2   : > { %v599_v18 = vmax.f32 %v595_v15, 0.0  ;;  %v600_v25 = vmax.f32 %v596_v19, 0.0 }
  0xc4   : > { %v603_v22 = vmin.f32 %v599_v18, 6.0  ;;  %v604_v31 = vmin.f32 %v600_v25, 6.0  ;;  %v1029_v18 = vsel %vm616_vm5, %v2774_v46, %v2784_v53  ;;  %v800_v25 = vperm.slane %v1983_v7, 1 }
  0xc5   : > { %v568_v23 = vpop.f32.mrf.mxu0  ;;  %v582_v24 = vpop.f32.mrf.mxu1 }
  0xc6   : > { %v587_v26 = vadd.f32 %v568_v23, %v469_v20  ;;  %v588_v27 = vadd.f32 %v582_v24, %v483_v21  ;;  %v631_v28 = vrot.slane %v603_v22, 7  ;;  %v632_v35 = vrot.slane %v604_v31, 7 }
  0xc7   : > { %v751_v31 = vsel %vm750_vm15, %v2770_v43, %v2776_v47 }
  0xc8   : > { %v597_v29 = vadd.f32 %v591_v9, %v587_v26  ;;  %v598_v30 = vadd.f32 %v592_v14, %v588_v27  ;;  %637 = vrot.lane.b32.xlu0 %v631_v28, %s2452_s23  ;;  %v1986_v9 = vld [vmem:[%s3565_s3 + $0xc] sm:$0x3] }
  0xc9   : > { %v983_v17 = vperm.slane %v1986_v9, 0  ;;  %v984_v27 = vperm.slane %v1986_v9, 1 }
  0xca   : > { %v601_v32 = vmax.f32 %v597_v29, 0.0  ;;  %v602_v34 = vmax.f32 %v598_v30, 0.0 }
  0xcc   : > { %v605_v33 = vmin.f32 %v601_v32, 6.0  ;;  %v606_v37 = vmin.f32 %v602_v34, 6.0 }
  0xce   : > { %v633_v36 = vrot.slane %v605_v33, 7  ;;  %v635_v39 = vrot.slane %v606_v37, 7 }
  0xd0   : > { %639 = vrot.lane.b32.xlu0 %v632_v35, %s2452_s23  ;;  %645 = vrot.lane.b32.xlu2 %v633_v36, %s2452_s23  ;;  %v634_v38 = vsel %vm630_vm4, %v631_v28, %v633_v36  ;;  %v636_v40 = vsel %vm630_vm4, %v632_v35, %v635_v39 }
  0xd1   : > { %641 = vrot.lane.b32.xlu1 %v634_v38, %s2452_s23 }
  0xd8   : > { %647 = vrot.lane.b32.xlu2 %v635_v39, %s2452_s23 }
  0xd9   : > { %643 = vrot.lane.b32.xlu1 %v636_v40, %s2452_s23  ;;  %s2455_s23 = smov 112  }
 0x12a   : > { %v646_v52 = vpop.permute.xlu2 %645 }
 0x12b   : > { %671 = vst.msk [vmem:[#allocation2 + $0x30] sm:$0x1] %vm670_vm10, %v646_v52 }
 0x132   : > { %v648_v55 = vpop.permute.xlu2 %647  ;;  %v2814_v10 = vld [vmem:[#allocation2 + $0x30] sm:$0x1] }
 0x133   : > { %v651_v56 = vsel %vm616_vm5, %v646_v52, %v648_v55  ;;  %674 = vst.msk [vmem:[#allocation2 + $0x40] sm:$0x1] %vm673_vm11, %v648_v55  ;;  %v2829_v21 = vmul.f32 %v799_v8, %v2814_v10  ;;  %v2831_v22 = vld [vmem:[#allocation2 + $0x30] sm:$0x3] }
 0x134   : > { %672 = vst [vmem:[#allocation2 + $0x38] sm:$0x1] %v651_v56  ;;  %v2843_v32 = vmul.f32 %v983_v17, %v2831_v22 }
 0x135   : > { %v822_v35 = vrot.slane %v2829_v21, 1 }
 0x13a   : > { %v638_v57 = vpop.permute.xlu0 %637 }
 0x13b   : > { %662 = vst.msk [vmem:[#allocation2] sm:$0xfe] %vm661_vm12, %v638_v57  ;;  %v979_v13 = vld [vmem:[#allocation2 + $0x38] sm:$0x3] }
 0x13c   : > { %v1040_v23 = vmul.f32 %v1029_v18, %v979_v13  ;;  %v1110_v24 = vmul.f32 %v1099_v12, %v979_v13  ;;  %v2835_v26 = vld [vmem:[#allocation2 + $0x38] sm:$0x1]  ;;  %v992_v52 = vmul.f32 %v984_v27, %v979_v13 }
 0x13d   : > { %v808_v39 = vmul.f32 %v800_v25, %v2835_v26 }
 0x13e   : > { %v1062_v37 = vrot.slane %v1040_v23, 2  ;;  %v1132_v38 = vrot.slane %v1110_v24, 2 }
 0x142   : > { %v640_v59 = vpop.permute.xlu0 %639  ;;  %v2791_v60 = vld [vmem:[#allocation2] sm:$0xff] }
 0x143   : > { %v649_v61 = vsel %vm616_vm5, %v638_v57, %v640_v59  ;;  %665 = vst.msk [vmem:[#allocation2 + $0x10] sm:$0xfe] %vm664_vm13, %v640_v59  ;;  %v642_v62 = vpop.permute.xlu1 %641  ;;  %v704_v63 = vmul.f32 %v697_v45, %v2791_v60  ;;  %v755_v2 = vmul.f32 %v2770_v43, %v2791_v60  ;;  %v2847_v34 = vld [vmem:[#allocation2] sm:$0xfe] }
 0x144   : > { %663 = vst [vmem:[#allocation2 + $0x8] sm:$0xfe] %v649_v61  ;;  %v2851_v40 = vld [vmem:[#allocation2] sm:$0xfc]  ;;  %v803_v59 = vmul.f32 %v799_v8, %v2847_v34  ;;  %v849_v61 = vmul.f32 %v2782_v51, %v2847_v34 }
 0x145   : > { %667 = vst.msk [vmem:[#allocation2 + $0x18] sm:$0xff] %vm666_vm14, %v642_v62  ;;  %716 = vrot.lane.b32.xlu0 %v704_v63, %s2455_s23 }
 0x146   : > { %v816_v13 = vrot.slane %v803_v59, 1  ;;  %v867_v24 = vrot.slane %v849_v61, 1 }
 0x14a   : > { %v689_v0 = vld [vmem:[#allocation2 + $0x10] sm:$0xff] }
 0x14b   : > { %v644_v1 = vpop.permute.xlu1 %643  ;;  %v706_v3 = vmul.f32 %v699_v48, %v689_v0  ;;  %v757_v14 = vmul.f32 %v2776_v47, %v689_v0  ;;  %v977_v20 = vld [vmem:[#allocation2 + $0x8] sm:$0xfc] }
 0x14c   : > { %v2799_v4 = vsel %vm616_vm5, %v642_v62, %v644_v1  ;;  %669 = vst.msk [vmem:[#allocation2 + $0x28] sm:$0xff] %vm616_vm5, %v644_v1  ;;  %v2802_v5 = vld [vmem:[#allocation2 + $0x18] sm:$0xff]  ;;  %v1034_v28 = vmul.f32 %v1029_v18, %v977_v20  ;;  %v1104_v30 = vmul.f32 %v1099_v12, %v977_v20  ;;  %v2845_v33 = vld [vmem:[#allocation2 + $0x8] sm:$0xff] }
 0x14d   : > { %767 = vrot.lane.b32.xlu0 %v755_v2, %s2456_s18  ;;  %720 = vrot.lane.b32.xlu1 %v706_v3, %s2455_s23  ;;  %v707_v6 = vmul.f32 %v697_v45, %v2802_v5  ;;  %v708_v16 = vmul.f32 %v700_v11, %v2799_v4  ;;  %v1037_v29 = vmul.f32 %v1029_v18, %v2799_v4  ;;  %v2853_v41 = vld [vmem:[#allocation2 + $0x8] sm:$0xfe]  ;;  %v824_v3 = vrot.slane %v808_v39, 1 }
 0x14e   : > { %v1054_v36 = vrot.slane %v1034_v28, 2  ;;  %v1107_v45 = vmul.f32 %v1099_v12, %v2799_v4  ;;  %v705_v55 = vmul.f32 %v700_v11, %v2845_v33  ;;  %v759_v56 = vmul.f32 %v751_v31, %v2799_v4 }
 0x14f   : > { %722 = vrot.lane.b32.xlu2 %v707_v6, %s2455_s23  ;;  %v1055_v42 = vrot.slane %v1037_v29, 2  ;;  %v2860_v57 = vmul.f32 %v2782_v51, %v2802_v5  ;;  %v758_v1 = vmul.f32 %v2770_v43, %v2802_v5  ;;  %v804_v2 = vmul.f32 %v800_v25, %v2853_v41 }
 0x150   : > { %v1125_v0 = vrot.slane %v1107_v45, 2  ;;  %v987_v6 = vmul.f32 %v983_v17, %v2851_v40  ;;  %v805_v11 = vmul.f32 %v799_v8, %v2802_v5  ;;  %v806_v12 = vmul.f32 %v800_v25, %v2799_v4 }
 0x151   : > { %v2866_v62 = vsel %vm999_vm0, %v1054_v36, %v1055_v42  ;;  %v2869_v63 = vsel %vm999_vm0, %v1055_v42, %v1062_v37  ;;  %v868_v43 = vrot.slane %v2860_v57, 1  ;;  %v989_v21 = vmul.f32 %v983_v17, %v2802_v5 }
 0x152   : > { %v2881_v9 = vsel %vm999_vm0, %v1125_v0, %v1132_v38  ;;  %v817_v18 = vrot.slane %v805_v11, 1  ;;  %v990_v23 = vmul.f32 %v984_v27, %v2799_v4  ;;  %v1006_v29 = vrot.slane %v2843_v32, 2  ;;  %v835_v11 = vld [vmem:[#allocation2 + $0x40] sm:$0x1] }
 0x153   : > { %v2821_v15 = vld [vmem:[#allocation2 + $0x28] sm:$0xff]  ;;  %v1008_v8 = vrot.slane %v992_v52, 2  ;;  %v756_v17 = vmul.f32 %v751_v31, %v2845_v33  ;;  %v1000_v37 = vrot.slane %v987_v6, 2  ;;  %v1001_v38 = vrot.slane %v989_v21, 2 }
 0x154   : > { %v709_v19 = vmul.f32 %v699_v48, %v2821_v15  ;;  %v1124_v48 = vrot.slane %v1104_v30, 2  ;;  %v2891_v25 = vsel %vm499_vm3, %v816_v13, %v817_v18  ;;  %v2897_v36 = vsel %vm499_vm3, %v817_v18, %v822_v35 }
 0x155   : > { %771 = vrot.lane.b32.xlu1 %v757_v14, %s2456_s18  ;;  %724 = vrot.lane.b32.xlu0 %v708_v16, %s2455_s23  ;;  %v819_v14 = vrot.slane %v804_v2, 1  ;;  %v988_v16 = vmul.f32 %v984_v27, %v977_v20  ;;  %v834_v27 = vld [vmem:[#allocation2 + $0x10] sm:$0xfe]  ;;  %v1004_v39 = vrot.slane %v990_v23, 2  ;;  %v760_v32 = vmul.f32 %v2776_v47, %v2821_v15 }
 0x156   : > { %v2878_v7 = vsel %vm999_vm0, %v1124_v48, %v1125_v0  ;;  %v869_v42 = vsel %vm499_vm3, %v867_v24, %v868_v43  ;;  %v854_v45 = vmul.f32 %v2772_v44, %v2821_v15  ;;  %v922_v35 = vmul.f32 %v2780_v50, %v2802_v5 }
 0x157   : > { %726 = vrot.lane.b32.xlu2 %v709_v19, %s2455_s23  ;;  %v820_v19 = vrot.slane %v806_v12, 1  ;;  %v1003_v28 = vrot.slane %v988_v16, 2  ;;  %v2913_v31 = vsel %vm999_vm0, %v1000_v37, %v1001_v38  ;;  %v2919_v47 = vsel %vm999_vm0, %v1001_v38, %v1006_v29  ;;  %v2947_v29 = vld [vmem:[#allocation2 + $0x10] sm:$0xfc] }
 0x158   : > { %v851_v52 = vmul.f32 %v2772_v44, %v834_v27  ;;  %v855_v57 = vmul.f32 %v2782_v51, %v2814_v10  ;;  %v874_v59 = vrot.slane %v854_v45, 1  ;;  %v938_v61 = vrot.slane %v922_v35, 1 }
 0x159   : > { %v2894_v30 = vsel %vm499_vm3, %v819_v14, %v820_v19  ;;  %v2900_v20 = vsel %vm499_vm3, %v820_v19, %v824_v3  ;;  %v2916_v48 = vsel %vm999_vm0, %v1003_v28, %v1004_v39  ;;  %v2936_v12 = vmul.f32 %v2774_v46, %v2802_v5 }
 0x15a   : > { %v873_v0 = vrot.slane %v851_v52, 1  ;;  %v876_v2 = vrot.slane %v855_v57, 1  ;;  %v921_v14 = vmul.f32 %v2786_v54, %v834_v27  ;;  %v1033_v16 = vmul.f32 %v2774_v46, %v2851_v40 }
 0x15b   : > { %v857_v18 = vmul.f32 %v2772_v44, %v835_v11  ;;  %v1052_v21 = vrot.slane %v2936_v12, 2  ;;  %v2955_v27 = vmul.f32 %v2789_v58, %v2802_v5  ;;  %v1035_v38 = vmul.f32 %v2784_v53, %v2947_v29 }
 0x15c   : > { %v875_v3 = vsel %vm499_vm3, %v873_v0, %v874_v59  ;;  %v877_v13 = vsel %vm499_vm3, %v868_v43, %v876_v2  ;;  %v943_v23 = vrot.slane %v921_v14, 1  ;;  %v1051_v24 = vrot.slane %v1033_v16, 2 }
 0x15d   : > { %718 = vrot.lane.b32.xlu1 %v705_v55, %s2455_s23  ;;  %775 = vrot.lane.b32.xlu0 %v759_v56, %s2456_s18  ;;  %v919_v55 = vmul.f32 %v2780_v50, %v2847_v34  ;;  %v2925_v56 = vsel %vm999_vm0, %v1004_v39, %v1008_v8  ;;  %v924_v34 = vmul.f32 %v2786_v54, %v2821_v15  ;;  %v880_v28 = vrot.slane %v857_v18, 1 }
 0x15e   : > { %v1053_v43 = vsel %vm999_vm0, %v1051_v24, %v1052_v21  ;;  %v1103_v39 = vmul.f32 %v2789_v58, %v2851_v40  ;;  %v1122_v45 = vrot.slane %v2955_v27, 2  ;;  %v1057_v35 = vrot.slane %v1035_v38, 2 }
 0x15f   : > { %773 = vrot.lane.b32.xlu2 %v758_v1, %s2456_s18  ;;  %v937_v1 = vrot.slane %v919_v55, 1  ;;  %v944_v19 = vrot.slane %v924_v34, 1  ;;  %v881_v37 = vsel %vm499_vm3, %v874_v59, %v880_v28  ;;  %v845_v55 = vsel %vm616_vm5, %v2782_v51, %v2772_v44 }
 0x160   : > { %v1121_v52 = vrot.slane %v1103_v39, 2  ;;  %v850_v40 = vmul.f32 %v845_v55, %v2853_v41  ;;  %v856_v2 = vmul.f32 %v845_v55, %v2835_v26  ;;  %v927_v44 = vmul.f32 %v2786_v54, %v835_v11 }
 0x161   : > { %v939_v6 = vsel %vm499_vm3, %v937_v1, %v938_v61  ;;  %v945_v8 = vsel %vm499_vm3, %v943_v23, %v944_v19  ;;  %v853_v1 = vmul.f32 %v845_v55, %v2799_v4  ;;  %v915_v34 = vsel %vm750_vm15, %v2780_v50, %v2786_v54 }
 0x162   : > { %v1123_v0 = vsel %vm999_vm0, %v1121_v52, %v1122_v45  ;;  %v870_v51 = vrot.slane %v850_v40, 1  ;;  %v950_v12 = vrot.slane %v927_v44, 1  ;;  %v923_v16 = vmul.f32 %v915_v34, %v2799_v4 }
 0x163   : > { %v926_v18 = vmul.f32 %v915_v34, %v2835_v26  ;;  %v1039_v23 = vmul.f32 %v2774_v46, %v2831_v22  ;;  %v1109_v27 = vmul.f32 %v2789_v58, %v2831_v22 }
 0x164   : > { %v951_v11 = vsel %vm499_vm3, %v944_v19, %v950_v12  ;;  %v941_v54 = vrot.slane %v923_v16, 1  ;;  %v1019_v19 = vld [vmem:[#allocation2 + $0x40] sm:$0x3] }
 0x165   : > { %769 = vrot.lane.b32.xlu1 %v756_v17, %s2456_s18  ;;  %882 = vrot.lane.b32.xlu0 %v869_v42, %s2455_s23  ;;  %v1038_v17 = vmul.f32 %v2784_v53, %v2821_v15  ;;  %v948_v24 = vrot.slane %v926_v18, 1  ;;  %v1060_v28 = vrot.slane %v1039_v23, 2  ;;  %v1111_v58 = vmul.f32 %v2778_v49, %v1019_v19 }
 0x167   : > { %777 = vrot.lane.b32.xlu2 %v760_v32, %s2456_s18  ;;  %v925_v32 = vmul.f32 %v2780_v50, %v2814_v10  ;;  %v1058_v42 = vrot.slane %v1038_v17, 2  ;;  %v1061_v26 = vsel %vm999_vm0, %v1052_v21, %v1060_v28  ;;  %v1108_v21 = vmul.f32 %v2778_v49, %v2821_v15  ;;  %v2297_v28 = vld [vmem:[%s3567_s5 + $0xcc] sm:$0xf0] }
 0x168   : > { %v1134_v15 = vrot.slane %v1111_v58, 2 }
 0x169   : > { %v946_v57 = vrot.slane %v925_v32, 1  ;;  %v1059_v59 = vsel %vm999_vm0, %v1057_v35, %v1058_v42 }
 0x16b   : > { %v947_v10 = vsel %vm499_vm3, %v938_v61, %v946_v57  ;;  %v920_v61 = vmul.f32 %v915_v34, %v2853_v41 }
 0x16d   : > { %886 = vrot.lane.b32.xlu1 %v875_v3, %s2455_s23  ;;  %952 = vrot.lane.b32.xlu0 %v939_v6, %s2456_s18  ;;  %v871_v3 = vrot.slane %v853_v1, 1  ;;  %v878_v6 = vrot.slane %v856_v2, 1  ;;  %v940_v50 = vrot.slane %v920_v61, 1 }
 0x16f   : > { %888 = vrot.lane.b32.xlu2 %v877_v13, %s2455_s23  ;;  %v872_v13 = vsel %vm499_vm3, %v870_v51, %v871_v3  ;;  %v879_v14 = vsel %vm499_vm3, %v871_v3, %v878_v6  ;;  %v942_v41 = vsel %vm499_vm3, %v940_v50, %v941_v54  ;;  %v2299_v50 = vld [vmem:[%s3567_s5 + $0xe4] sm:$0xf] }
 0x175   : > { %956 = vrot.lane.b32.xlu1 %v945_v8, %s2456_s18  ;;  %1066 = vrot.lane.b32.xlu0 %v1053_v43, %s2455_s23  ;;  %v949_v8 = vsel %vm499_vm3, %v941_v54, %v948_v24  ;;  %v1041_v43 = vmul.f32 %v2784_v53, %v1019_v19  ;;  %v2105_v24 = vld [vmem:[%s3567_s5 + $0xf0] sm:$0xf0]  ;;  %v2295_v19 = vld [vmem:[%s3567_s5 + $0xc4] sm:$0xf]  ;;  %vm1786_vm3 = vcmask 253952  }
 0x177   : > { %892 = vrot.lane.b32.xlu2 %v881_v37, %s2455_s23  ;;  %v1064_v17 = vrot.slane %v1041_v43, 2  ;;  %v1130_v37 = vrot.slane %v1109_v27, 2  ;;  %v2231_v43 = vld [vmem:[%s3567_s5 + $0x1e0] sm:$0xf] }
 0x179   : > { %v1065_v46 = vsel %vm999_vm0, %v1058_v42, %v1064_v17  ;;  %v1131_v53 = vsel %vm999_vm0, %v1122_v45, %v1130_v37  ;;  %v2333_v37 = vld [vmem:[%s3567_s5 + $0x1ec] sm:$0xf0] }
 0x17d   : > { %1070 = vrot.lane.b32.xlu1 %v1059_v59, %s2455_s23  ;;  %1136 = vrot.lane.b32.xlu0 %v1123_v0, %s2456_s18 }
 0x17f   : > { %958 = vrot.lane.b32.xlu2 %v947_v10, %s2456_s18 }
 0x185   : > { %884 = vrot.lane.b32.xlu1 %v872_v13, %s2455_s23  ;;  %890 = vrot.lane.b32.xlu0 %v879_v14, %s2455_s23 }
 0x187   : > { %962 = vrot.lane.b32.xlu2 %v951_v11, %s2456_s18 }
 0x18d   : > { %954 = vrot.lane.b32.xlu1 %v942_v41, %s2456_s18  ;;  %960 = vrot.lane.b32.xlu0 %v949_v8, %s2456_s18  ;;  %v2087_v41 = vld [vmem:[%s3567_s5 + $0xc0] sm:$0xf]  ;;  %v2108_v8 = vor.u32 %v2299_v50, %v2105_v24 }
 0x18e   : > { %v2088_v27 = vor.u32 %v2297_v28, %v2087_v41  ;;  %v2183_v50 = vld [vmem:[%s3567_s5 + $0x180] sm:$0xf]  ;;  %v2319_v28 = vld [vmem:[%s3567_s5 + $0x184] sm:$0xf] }
 0x18f   : > { %1072 = vrot.lane.b32.xlu2 %v1061_v26, %s2455_s23  ;;  %v2089_v26 = vld [vmem:[%s3567_s5 + $0xd0] sm:$0xf0]  ;;  %1602 = vmatpush.bf16.msra.mxu0 %v2108_v8 }
 0x190   : > { %v2185_v8 = vld [vmem:[%s3567_s5 + $0x190] sm:$0xf0] }
 0x195   : > { %1068 = vrot.lane.b32.xlu1 %v2866_v62, %s2455_s23  ;;  %1074 = vrot.lane.b32.xlu0 %v2869_v63, %s2455_s23  ;;  %v1105_v62 = vmul.f32 %v2778_v49, %v2947_v29  ;;  %v1128_v63 = vrot.slane %v1108_v21, 2  ;;  %v679_v49 = vld [vmem:[%s3565_s3] sm:$0x3]  ;;  %v2331_v21 = vld [vmem:[%s3567_s5 + $0x1e4] sm:$0xf] }
 0x196   : > { %v682_v52 = vperm.slane %v679_v49, 1  ;;  %v681_v55 = vperm.slane %v679_v49, 0 }
 0x197   : > { %1076 = vrot.lane.b32.xlu2 %v1065_v46, %s2455_s23  ;;  %v1127_v22 = vrot.slane %v1105_v62, 2  ;;  %v2232_v62 = vor.u32 %v2333_v37, %v2231_v43  ;;  %v2281_v43 = vld [vmem:[%s3567_s5 + $0x4c] sm:$0xf0]  ;;  %v2025_v37 = vld [vmem:[%s3567_s5 + $0x50] sm:$0xf0] }
 0x198   : > { %v687_v59 = vmul.f32 %v681_v55, %v2802_v5  ;;  %v688_v40 = vmul.f32 %v682_v52, %v2799_v4  ;;  %v685_v3 = vmul.f32 %v681_v55, %v2791_v60  ;;  %v686_v6 = vmul.f32 %v682_v52, %v2845_v33  ;;  %v2103_v60 = vld [vmem:[%s3567_s5 + $0xe0] sm:$0xf]  ;;  %v2301_v33 = vld [vmem:[%s3567_s5 + $0xec] sm:$0xf0] }
 0x199   : > { %v1129_v38 = vsel %vm999_vm0, %v1127_v22, %v1128_v63  ;;  %v2104_v23 = vor.u32 %v2301_v33, %v2103_v60  ;;  %1588 = vmatpush.bf16.msrb.mxu3 %v2232_v62  ;;  %v2041_v33 = vld [vmem:[%s3567_s5 + $0x70] sm:$0xf0]  ;;  %v2317_v62 = vld [vmem:[%s3567_s5 + $0x16c] sm:$0xf0] }
 0x19b   : > { %1574 = vmatpush.bf16.msrb.mxu2 %v2104_v23  ;;  %v2321_v23 = vld [vmem:[%s3567_s5 + $0x18c] sm:$0xf0] }
 0x19c   : > { %v2184_v41 = vor.u32 %v2321_v23, %v2183_v50  ;;  %v2307_v23 = vld [vmem:[%s3567_s5 + $0x124] sm:$0xf] }
 0x19d   : > { %1138 = vrot.lane.b32.xlu1 %v2878_v7, %s2456_s18  ;;  %1144 = vrot.lane.b32.xlu0 %v2881_v9, %s2456_s18  ;;  %v1135_v7 = vsel %vm999_vm0, %v1128_v63, %v1134_v15 }
 0x19f   : > { %1142 = vrot.lane.b32.xlu2 %v1131_v53, %s2456_s18  ;;  %v2233_v53 = vld [vmem:[%s3567_s5 + $0x1f0] sm:$0xf0]  ;;  %1575 = vmatpush.bf16.msrb.mxu2 %v2088_v27  ;;  %v2279_v27 = vld [vmem:[%s3567_s5 + $0x44] sm:$0xf] }
 0x1a0   : > { %v2236_v63 = vor.u32 %v2331_v21, %v2233_v53  ;;  %v2028_v53 = vor.u32 %v2279_v27, %v2025_v37  ;;  %v2296_v27 = vld [vmem:[%s3567_s5 + $0xcc] sm:$0xf]  ;;  %v2097_v37 = vld [vmem:[%s3567_s5 + $0xd8] sm:$0xf0] }
 0x1a2   : > { %1616 = vmatpush.bf16.msra.mxu1 %v2236_v63  ;;  %v2315_v63 = vld [vmem:[%s3567_s5 + $0x164] sm:$0xf] }
 0x1a5   : > { %1140 = vrot.lane.b32.xlu1 %v1129_v38, %s2456_s18 }
 0x1a7   : > { %1146 = vrot.lane.b32.xlu2 %v1135_v7, %s2456_s18 }
 0x1a9   : > { %v723_v9 = vpop.permute.xlu2 %722 }
 0x1b1   : > { %v727_v39 = vpop.permute.xlu2 %726 }
 0x1b7   : > { %v717_v32 = vpop.permute.xlu0 %716 }
 0x1b9   : > { %v774_v42 = vpop.permute.xlu2 %773 }
 0x1bf   : > { %v768_v29 = vpop.permute.xlu0 %767  ;;  %v721_v45 = vpop.permute.xlu1 %720 }
 0x1c1   : > { %v778_v35 = vpop.permute.xlu2 %777 }
 0x1c7   : > { %v772_v57 = vpop.permute.xlu1 %771  ;;  %v725_v0 = vpop.permute.xlu0 %724 }
 0x1c8   : > { %v731_v1 = vsel %vm728_vm1, %v723_v9, %v725_v0  ;;  %v732_v10 = vsel %vm728_vm1, %v725_v0, %v727_v39  ;;  %v2071_v9 = vld [vmem:[%s3567_s5 + $0xa0] sm:$0xf]  ;;  %v2293_v39 = vld [vmem:[%s3567_s5 + $0xac] sm:$0xf0]  ;;  %v2217_v0 = vld [vmem:[%s3567_s5 + $0x1d0] sm:$0xf0] }
 0x1c9   : > { %v3032_v2 = vpop.permute.xlu2 %888  ;;  %v739_v44 = vadd.f32 %v731_v1, %v687_v59  ;;  %v740_v51 = vadd.f32 %v732_v10, %v688_v40  ;;  %v2327_v59 = vld [vmem:[%s3567_s5 + $0x1c4] sm:$0xf]  ;;  %v2055_v40 = vld [vmem:[%s3567_s5 + $0x80] sm:$0xf] }
 0x1ca   : > { %v2287_v10 = vld [vmem:[%s3567_s5 + $0x84] sm:$0xf] }
 0x1cf   : > { %v719_v34 = vpop.permute.xlu1 %718  ;;  %v776_v12 = vpop.permute.xlu0 %775 }
 0x1d0   : > { %v729_v5 = vsel %vm728_vm1, %v717_v32, %v719_v34  ;;  %v730_v13 = vsel %vm728_vm1, %v719_v34, %v721_v45  ;;  %v782_v4 = vsel %vm779_vm2, %v774_v42, %v776_v12  ;;  %v783_v14 = vsel %vm779_vm2, %v776_v12, %v778_v35  ;;  %v2291_v32 = vld [vmem:[%s3567_s5 + $0xa4] sm:$0xf]  ;;  %v2215_v45 = vld [vmem:[%s3567_s5 + $0x1c0] sm:$0xf]  ;;  %v2329_v35 = vld [vmem:[%s3567_s5 + $0x1cc] sm:$0xf0] }
 0x1d1   : > { %v737_v61 = vadd.f32 %v729_v5, %v685_v3  ;;  %v738_v16 = vadd.f32 %v730_v13, %v686_v6  ;;  %v790_v11 = vadd.f32 %v782_v4, %v739_v44  ;;  %v791_v18 = vadd.f32 %v783_v14, %v740_v51  ;;  %v3049_v54 = vpop.permute.xlu2 %892  ;;  %v2057_v44 = vld [vmem:[%s3567_s5 + $0x90] sm:$0xf0]  ;;  %v2199_v6 = vld [vmem:[%s3567_s5 + $0x1a0] sm:$0xf]  ;;  %v2325_v34 = vld [vmem:[%s3567_s5 + $0x1ac] sm:$0xf0] }
 0x1d2   : > { %v2072_v42 = vor.u32 %v2293_v39, %v2071_v9  ;;  %v2060_v3 = vor.u32 %v2287_v10, %v2057_v44  ;;  %v2323_v12 = vld [vmem:[%s3567_s5 + $0x1a4] sm:$0xf]  ;;  %v2200_v5 = vor.u32 %v2325_v34, %v2199_v6  ;;  %v2201_v13 = vld [vmem:[%s3567_s5 + $0x1b0] sm:$0xf0]  ;;  %v2007_v39 = vld [vmem:[%s3567_s5 + $0x20] sm:$0xf] }
 0x1d3   : > { %v3070_v17 = vadd.f32 %v2897_v36, %v790_v11  ;;  %v3073_v46 = vadd.f32 %v2900_v20, %v791_v18  ;;  %v2092_v36 = vor.u32 %v2295_v19, %v2089_v26  ;;  %v2285_v11 = vld [vmem:[%s3567_s5 + $0x6c] sm:$0xf0]  ;;  %v2283_v18 = vld [vmem:[%s3567_s5 + $0x64] sm:$0xf]  ;;  %v2023_v19 = vld [vmem:[%s3567_s5 + $0x40] sm:$0xf]  ;;  %v2188_v26 = vor.u32 %v2319_v28, %v2185_v8 }
 0x1d4   : > { %1576 = vmatpush.bf16.msrb.mxu2 %v2072_v42  ;;  %v2044_v24 = vor.u32 %v2283_v18, %v2041_v33  ;;  %v2024_v21 = vor.u32 %v2281_v43, %v2023_v19  ;;  %v2275_v42 = vld [vmem:[%s3567_s5 + $0x24] sm:$0xf]  ;;  %v2273_v10 = vld [vmem:[%s3567_s5 + $0xc] sm:$0xf0]  ;;  %v2111_v34 = vld [vmem:[%s3567_s5 + $0xe8] sm:$0xf] }
 0x1d5   : > { %1603 = vmatpush.bf16.msra.mxu0 %v2092_v36  ;;  %v2167_v36 = vld [vmem:[%s3567_s5 + $0x160] sm:$0xf]  ;;  %v2271_v44 = vld [vmem:[%s3567_s5 + $0x4] sm:$0xf]  ;;  %v2298_v43 = vld [vmem:[%s3567_s5 + $0xd4] sm:$0xf0] }
 0x1d7   : > { %v770_v20 = vpop.permute.xlu1 %769  ;;  %v3084_v58 = vpop.permute.xlu0 %882 }
 0x1d8   : > { %v780_v22 = vsel %vm779_vm2, %v768_v29, %v770_v20  ;;  %v781_v38 = vsel %vm779_vm2, %v770_v20, %v772_v57  ;;  %v2073_v29 = vld [vmem:[%s3567_s5 + $0xb0] sm:$0xf0]  ;;  %v2216_v57 = vor.u32 %v2329_v35, %v2215_v45  ;;  %v2151_v35 = vld [vmem:[%s3567_s5 + $0x140] sm:$0xf] }
 0x1d9   : > { %v788_v15 = vadd.f32 %v780_v22, %v737_v61  ;;  %v789_v7 = vadd.f32 %v781_v38, %v738_v16  ;;  %v2076_v55 = vor.u32 %v2291_v32, %v2073_v29  ;;  %v3121_v1 = vpop.permute.xlu2 %958  ;;  %v2204_v61 = vor.u32 %v2323_v12, %v2201_v13  ;;  %v2039_v16 = vld [vmem:[%s3567_s5 + $0x60] sm:$0xf]  ;;  %v2169_v38 = vld [vmem:[%s3567_s5 + $0x170] sm:$0xf0]  ;;  %v2277_v32 = vld [vmem:[%s3567_s5 + $0x2c] sm:$0xf0] }
 0x1da   : > { %1589 = vmatpush.bf16.msrb.mxu3 %v2216_v57  ;;  %v2040_v60 = vor.u32 %v2285_v11, %v2039_v16  ;;  %v2168_v22 = vor.u32 %v2317_v62, %v2167_v36  ;;  %v2172_v9 = vor.u32 %v2315_v63, %v2169_v38  ;;  %v2008_v29 = vor.u32 %v2277_v32, %v2007_v39  ;;  %v2009_v45 = vld [vmem:[%s3567_s5 + $0x30] sm:$0xf0]  ;;  %v2302_v12 = vld [vmem:[%s3567_s5 + $0xf4] sm:$0xf0]  ;;  %v2135_v16 = vld [vmem:[%s3567_s5 + $0x120] sm:$0xf] }
 0x1db   : > { %v3107_v49 = vadd.f32 %v2891_v25, %v788_v15  ;;  %v3110_v52 = vadd.f32 %v2894_v30, %v789_v7  ;;  %v2220_v25 = vor.u32 %v2327_v59, %v2217_v0  ;;  %v2289_v30 = vld [vmem:[%s3567_s5 + $0x8c] sm:$0xf0]  ;;  %1604 = vmatpush.bf16.msra.mxu0 %v2076_v55  ;;  %v2012_v57 = vor.u32 %v2275_v42, %v2009_v45  ;;  %v2311_v0 = vld [vmem:[%s3567_s5 + $0x144] sm:$0xf]  ;;  %v2121_v62 = vld [vmem:[%s3567_s5 + $0x110] sm:$0xf0] }
 0x1dc   : > { %v2056_v51 = vor.u32 %v2289_v30, %v2055_v40  ;;  %v2313_v55 = vld [vmem:[%s3567_s5 + $0x14c] sm:$0xf0]  ;;  %v2153_v40 = vld [vmem:[%s3567_s5 + $0x150] sm:$0xf0]  ;;  %v2112_v13 = vor.u32 %v2302_v12, %v2111_v34  ;;  %v2303_v36 = vld [vmem:[%s3567_s5 + $0x104] sm:$0xf]  ;;  %v2100_v38 = vor.u32 %v2296_v27, %v2097_v37 }
 0x1dd   : > { %1617 = vmatpush.bf16.msra.mxu1 %v2220_v25  ;;  %v2152_v59 = vor.u32 %v2313_v55, %v2151_v35  ;;  %v1991_v25 = vld [vmem:[%s3567_s5] sm:$0xf]  ;;  %v2156_v30 = vor.u32 %v2311_v0, %v2153_v40  ;;  %v2309_v11 = vld [vmem:[%s3567_s5 + $0x12c] sm:$0xf0]  ;;  %v2124_v39 = vor.u32 %v2303_v36, %v2121_v62  ;;  %v2239_v32 = vld [vmem:[%s3567_s5 + $0x1e8] sm:$0xf] }
 0x1de   : > { %1577 = vmatpush.bf16.msrb.mxu2 %v2056_v51  ;;  %1590 = vmatpush.bf16.msrb.mxu3 %v2200_v5  ;;  %v1993_v51 = vld [vmem:[%s3567_s5 + $0x10] sm:$0xf0]  ;;  %v2300_v5 = vld [vmem:[%s3567_s5 + $0xec] sm:$0xf]  ;;  %v2136_v50 = vor.u32 %v2309_v11, %v2135_v16  ;;  %v2334_v42 = vld [vmem:[%s3567_s5 + $0x1f4] sm:$0xf0] }
 0x1df   : > { %v3144_v4 = vpop.permute.xlu1 %886  ;;  %v3146_v14 = vpop.permute.xlu0 %952  ;;  %1605 = vmatpush.bf16.msra.mxu0 %v2060_v3  ;;  %v1992_v3 = vor.u32 %v2273_v10, %v1991_v25  ;;  %v1996_v6 = vor.u32 %v2271_v44, %v1993_v51  ;;  %v2079_v0 = vld [vmem:[%s3567_s5 + $0xa8] sm:$0xf]  ;;  %v2294_v40 = vld [vmem:[%s3567_s5 + $0xb4] sm:$0xf0]  ;;  %v2292_v25 = vld [vmem:[%s3567_s5 + $0xac] sm:$0xf] }
 0x1e0   : > { %v2223_v12 = vld [vmem:[%s3567_s5 + $0x1c8] sm:$0xf]  ;;  %v2209_v27 = vld [vmem:[%s3567_s5 + $0x1b8] sm:$0xf0] }
 0x1e1   : > { %1618 = vmatpush.bf16.msra.mxu1 %v2204_v61  ;;  %v3193_v20 = vpop.permute.xlu2 %962  ;;  %v2113_v61 = vld [vmem:[%s3567_s5 + $0xf8] sm:$0xf0]  ;;  %v2063_v16 = vld [vmem:[%s3567_s5 + $0x88] sm:$0xf] }
 0x1e2   : > { %1578 = vmatpush.bf16.msrb.mxu2 %v2040_v60  ;;  %1591 = vmatpush.bf16.msrb.mxu3 %v2184_v41  ;;  %v2116_v33 = vor.u32 %v2300_v5, %v2113_v61  ;;  %v2330_v5 = vld [vmem:[%s3567_s5 + $0x1d4] sm:$0xf0]  ;;  %v2225_v61 = vld [vmem:[%s3567_s5 + $0x1d8] sm:$0xf0]  ;;  %v2047_v62 = vld [vmem:[%s3567_s5 + $0x68] sm:$0xf] }
 0x1e3   : > { %1606 = vmatpush.bf16.msra.mxu0 %v2044_v24  ;;  %v2137_v24 = vld [vmem:[%s3567_s5 + $0x130] sm:$0xf0] }
 0x1e4   : > { %v2140_v28 = vor.u32 %v2307_v23, %v2137_v24  ;;  %v2207_v23 = vld [vmem:[%s3567_s5 + $0x1a8] sm:$0xf]  ;;  %v2224_v24 = vor.u32 %v2330_v5, %v2223_v12  ;;  %v2017_v12 = vld [vmem:[%s3567_s5 + $0x38] sm:$0xf0] }
 0x1e5   : > { %1619 = vmatpush.bf16.msra.mxu1 %v2188_v26  ;;  %v2095_v26 = vld [vmem:[%s3567_s5 + $0xc8] sm:$0xf] }
 0x1e6   : > { %1579 = vmatpush.bf16.msrb.mxu2 %v2024_v21  ;;  %1592 = vmatpush.bf16.msrb.mxu3 %v2168_v22  ;;  %v2119_v21 = vld [vmem:[%s3567_s5 + $0x100] sm:$0xf]  ;;  %v2096_v22 = vor.u32 %v2298_v43, %v2095_v26  ;;  %v2326_v26 = vld [vmem:[%s3567_s5 + $0x1b4] sm:$0xf0]  ;;  %v2324_v43 = vld [vmem:[%s3567_s5 + $0x1ac] sm:$0xf] }
 0x1e7   : > { %v3198_v15 = vpop.permute.xlu1 %956  ;;  %v3200_v7 = vpop.permute.xlu0 %1066  ;;  %1607 = vmatpush.bf16.msra.mxu0 %v2028_v53  ;;  %v2305_v53 = vld [vmem:[%s3567_s5 + $0x10c] sm:$0xf0] }
 0x1e9   : > { %1620 = vmatpush.bf16.msra.mxu1 %v2172_v9  ;;  %v3266_v41 = vpop.permute.xlu2 %1072  ;;  %v2120_v9 = vor.u32 %v2305_v53, %v2119_v21 }
 0x1ea   : > { %1580 = vmatpush.bf16.msrb.mxu2 %v2008_v29  ;;  %1593 = vmatpush.bf16.msrb.mxu3 %v2152_v59  ;;  %v2332_v29 = vld [vmem:[%s3567_s5 + $0x1ec] sm:$0xf]  ;;  %v2241_v59 = vld [vmem:[%s3567_s5 + $0x1f8] sm:$0xf0] }
 0x1eb   : > { %1608 = vmatpush.bf16.msra.mxu0 %v2012_v57  ;;  %v2240_v57 = vor.u32 %v2334_v42, %v2239_v32 }
 0x1ed   : > { %1621 = vmatpush.bf16.msra.mxu1 %v2156_v30  ;;  %v2081_v30 = vld [vmem:[%s3567_s5 + $0xb8] sm:$0xf0] }
 0x1ee   : > { %1581 = vmatpush.bf16.msrb.mxu2 %v1992_v3  ;;  %1594 = vmatpush.bf16.msrb.mxu3 %v2136_v50  ;;  %v2084_v10 = vor.u32 %v2292_v25, %v2081_v30  ;;  %v2065_v50 = vld [vmem:[%s3567_s5 + $0x98] sm:$0xf0]  ;;  %v2175_v25 = vld [vmem:[%s3567_s5 + $0x168] sm:$0xf]  ;;  %v2318_v30 = vld [vmem:[%s3567_s5 + $0x174] sm:$0xf0] }
 0x1ef   : > { %v3256_v18 = vpop.permute.xlu1 %1070  ;;  %v3258_v60 = vpop.permute.xlu0 %1136  ;;  %1609 = vmatpush.bf16.msra.mxu0 %v1996_v6 }
 0x1f1   : > { %1622 = vmatpush.bf16.msra.mxu1 %v2140_v28  ;;  %v3292_v63 = vpop.permute.xlu2 %1076 }
 0x1f2   : > { %1630 = vmatpush.bf16.msra.mxu2 %v2112_v13  ;;  %1595 = vmatpush.bf16.msrb.mxu3 %v2120_v9  ;;  %v2191_v9 = vld [vmem:[%s3567_s5 + $0x188] sm:$0xf] }
 0x1f3   : > { %1658 = vmatpush.bf16.msrb.mxu0 %v2116_v33 }
 0x1f5   : > { %1623 = vmatpush.bf16.msra.mxu1 %v2124_v39  ;;  %v2322_v39 = vld [vmem:[%s3567_s5 + $0x194] sm:$0xf0] }
 0x1f6   : > { %1631 = vmatpush.bf16.msra.mxu2 %v2096_v22  ;;  %1644 = vmatpush.bf16.msra.mxu3 %v2240_v57  ;;  %v2286_v22 = vld [vmem:[%s3567_s5 + $0x74] sm:$0xf0] }
 0x1f7   : > { %v885_v8 = vpop.permute.xlu1 %884  ;;  %v891_v19 = vpop.permute.xlu0 %890  ;;  %1659 = vmatpush.bf16.msrb.mxu0 %v2100_v38  ;;  %v2048_v32 = vor.u32 %v2286_v22, %v2047_v62  ;;  %v2143_v22 = vld [vmem:[%s3567_s5 + $0x128] sm:$0xf] }
 0x1f8   : > { %v894_v45 = vsel %vm728_vm1, %v3084_v58, %v885_v8  ;;  %v895_v35 = vsel %vm728_vm1, %v885_v8, %v3144_v4  ;;  %v896_v55 = vsel %vm728_vm1, %v3032_v2, %v891_v19  ;;  %v897_v58 = vsel %vm728_vm1, %v891_v19, %v3049_v54 }
 0x1f9   : > { %v2244_v4 = vor.u32 %v2332_v29, %v2241_v59  ;;  %v2080_v2 = vor.u32 %v2294_v40, %v2079_v0  ;;  %v902_v44 = vadd.f32 %v894_v45, %v3107_v49  ;;  %v903_v54 = vadd.f32 %v895_v35, %v3110_v52  ;;  %v2328_v49 = vld [vmem:[%s3567_s5 + $0x1cc] sm:$0xf]  ;;  %v3391_v38 = vpop.permute.xlu2 %1142  ;;  %v2193_v45 = vld [vmem:[%s3567_s5 + $0x198] sm:$0xf0]  ;;  %v2031_v35 = vld [vmem:[%s3567_s5 + $0x48] sm:$0xf] }
 0x1fa   : > { %v904_v51 = vadd.f32 %v896_v55, %v3070_v17  ;;  %v905_v3 = vadd.f32 %v897_v58, %v3073_v46  ;;  %v2228_v28 = vor.u32 %v2328_v49, %v2225_v61  ;;  %1645 = vmatpush.bf16.msra.mxu3 %v2224_v24  ;;  %v2320_v29 = vld [vmem:[%s3567_s5 + $0x18c] sm:$0xf]  ;;  %v2282_v59 = vld [vmem:[%s3567_s5 + $0x54] sm:$0xf0]  ;;  %v2033_v40 = vld [vmem:[%s3567_s5 + $0x58] sm:$0xf0]  ;;  %v2192_v58 = vor.u32 %v2322_v39, %v2191_v9 }
 0x1fb   : > { %1672 = vmatpush.bf16.msrb.mxu1 %v2244_v4  ;;  %1632 = vmatpush.bf16.msra.mxu2 %v2080_v2  ;;  %v2280_v0 = vld [vmem:[%s3567_s5 + $0x4c] sm:$0xf]  ;;  %v3425_v4 = vld [vmem:[%s3566_s4] sm:$0x3]  ;;  %v2196_v2 = vor.u32 %v2320_v29, %v2193_v45  ;;  %v2314_v61 = vld [vmem:[%s3567_s5 + $0x154] sm:$0xf0] }
 0x1fc   : > { %1660 = vmatpush.bf16.msrb.mxu0 %v2084_v10  ;;  %v2032_v10 = vor.u32 %v2282_v59, %v2031_v35  ;;  %v2272_v24 = vld [vmem:[%s3567_s5 + $0xc] sm:$0xf]  ;;  %v2306_v59 = vld [vmem:[%s3567_s5 + $0x114] sm:$0xf0] }
 0x1ff   : > { %v955_v6 = vpop.permute.xlu1 %954  ;;  %v961_v34 = vpop.permute.xlu0 %960  ;;  %1673 = vmatpush.bf16.msrb.mxu1 %v2228_v28  ;;  %v2001_v28 = vld [vmem:[%s3567_s5 + $0x18] sm:$0xf0] }
 0x200   : > { %v964_v52 = vsel %vm779_vm2, %v3146_v14, %v955_v6  ;;  %v965_v17 = vsel %vm779_vm2, %v955_v6, %v3198_v15  ;;  %v966_v46 = vsel %vm779_vm2, %v3121_v1, %v961_v34  ;;  %v967_v13 = vsel %vm779_vm2, %v961_v34, %v3193_v20  ;;  %v2290_v14 = vld [vmem:[%s3567_s5 + $0x94] sm:$0xf0]  ;;  %v2288_v20 = vld [vmem:[%s3567_s5 + $0x8c] sm:$0xf] }
 0x201   : > { %v972_v15 = vadd.f32 %v964_v52, %v902_v44  ;;  %v973_v11 = vadd.f32 %v965_v17, %v903_v54  ;;  %v974_v33 = vadd.f32 %v966_v46, %v904_v51  ;;  %v975_v1 = vadd.f32 %v967_v13, %v905_v3  ;;  %v2316_v54 = vld [vmem:[%s3567_s5 + $0x16c] sm:$0xf]  ;;  %v2177_v51 = vld [vmem:[%s3567_s5 + $0x178] sm:$0xf0]  ;;  %v2015_v3 = vld [vmem:[%s3567_s5 + $0x28] sm:$0xf] }
 0x202   : > { %v2064_v8 = vor.u32 %v2290_v14, %v2063_v16  ;;  %v2068_v19 = vor.u32 %v2288_v20, %v2065_v50  ;;  %v2036_v44 = vor.u32 %v2280_v0, %v2033_v40  ;;  %v2278_v6 = vld [vmem:[%s3567_s5 + $0x34] sm:$0xf0]  ;;  %v2276_v34 = vld [vmem:[%s3567_s5 + $0x2c] sm:$0xf]  ;;  %v2176_v52 = vor.u32 %v2318_v30, %v2175_v25  ;;  %v2159_v13 = vld [vmem:[%s3567_s5 + $0x148] sm:$0xf]  ;;  %v1147_v16 = vpop.permute.xlu2 %1146 }
 0x203   : > { %v1014_v37 = vadd.f32 %v2913_v31, %v972_v15  ;;  %v3376_v21 = vadd.f32 %v2916_v48, %v973_v11  ;;  %v1016_v53 = vadd.f32 %v2919_v47, %v974_v33  ;;  %v3380_v36 = vadd.f32 %v2925_v56, %v975_v1  ;;  %v2284_v31 = vld [vmem:[%s3567_s5 + $0x6c] sm:$0xf]  ;;  %v2049_v47 = vld [vmem:[%s3567_s5 + $0x78] sm:$0xf0]  ;;  %v1999_v33 = vld [vmem:[%s3567_s5 + $0x8] sm:$0xf] }
 0x204   : > { %v2208_v48 = vor.u32 %v2326_v26, %v2207_v23  ;;  %1633 = vmatpush.bf16.msra.mxu2 %v2064_v8  ;;  %1661 = vmatpush.bf16.msrb.mxu0 %v2068_v19  ;;  %v2212_v56 = vor.u32 %v2324_v43, %v2209_v27  ;;  %v2052_v42 = vor.u32 %v2284_v31, %v2049_v47  ;;  %v1162_v17 = vperm.slane %v3425_v4, 0  ;;  %v2312_v15 = vld [vmem:[%s3567_s5 + $0x14c] sm:$0xf]  ;;  %v2161_v11 = vld [vmem:[%s3567_s5 + $0x158] sm:$0xf0] }
 0x205   : > { %v2180_v46 = vor.u32 %v2316_v54, %v2177_v51  ;;  %v2020_v14 = vor.u32 %v2276_v34, %v2017_v12  ;;  %v2274_v23 = vld [vmem:[%s3567_s5 + $0x14] sm:$0xf0]  ;;  %v2160_v43 = vor.u32 %v2314_v61, %v2159_v13  ;;  %v2164_v62 = vor.u32 %v2312_v15, %v2161_v11 }
 0x206   : > { %1646 = vmatpush.bf16.msra.mxu3 %v2208_v48  ;;  %1674 = vmatpush.bf16.msrb.mxu1 %v2212_v56  ;;  %v2000_v31 = vor.u32 %v2274_v23, %v1999_v33  ;;  %v2145_v48 = vld [vmem:[%s3567_s5 + $0x138] sm:$0xf0]  ;;  %v1163_v56 = vperm.slane %v3425_v4, 1 }
 0x207   : > { %v3411_v55 = vpop.permute.xlu1 %1068  ;;  %v1075_v57 = vpop.permute.xlu0 %1074 }
 0x208   : > { %1634 = vmatpush.bf16.msra.mxu2 %v2048_v32  ;;  %1662 = vmatpush.bf16.msrb.mxu0 %v2052_v42  ;;  %v1078_v5 = vsel %vm728_vm1, %v3200_v7, %v3411_v55  ;;  %v1080_v49 = vsel %vm728_vm1, %v3266_v41, %v1075_v57  ;;  %v1081_v7 = vsel %vm728_vm1, %v1075_v57, %v3292_v63  ;;  %v2127_v57 = vld [vmem:[%s3567_s5 + $0x108] sm:$0xf] }
 0x209   : > { %v2016_v41 = vor.u32 %v2278_v6, %v2015_v3  ;;  %v1086_v1 = vadd.f32 %v1078_v5, %v1014_v37  ;;  %v1088_v20 = vadd.f32 %v1080_v49, %v1016_v53  ;;  %v1089_v27 = vadd.f32 %v1081_v7, %v3380_v36  ;;  %v2308_v36 = vld [vmem:[%s3567_s5 + $0x12c] sm:$0xf]  ;;  %v1244_v49 = vld [vmem:[%s3568_s6] sm:$0xf] }
 0x20a   : > { %1647 = vmatpush.bf16.msra.mxu3 %v2192_v58  ;;  %1675 = vmatpush.bf16.msrb.mxu1 %v2196_v2  ;;  %v1079_v32 = vsel %vm728_vm1, %v3411_v55, %v3256_v18  ;;  %v2148_v35 = vor.u32 %v2308_v36, %v2145_v48  ;;  %v2304_v18 = vld [vmem:[%s3567_s5 + $0x10c] sm:$0xf]  ;;  %v2129_v55 = vld [vmem:[%s3567_s5 + $0x118] sm:$0xf0]  ;;  %v2128_v30 = vor.u32 %v2306_v59, %v2127_v57  ;;  %v1247_v13 = vperm.slane %v1244_v49, 1 }
 0x20b   : > { %v1087_v0 = vadd.f32 %v1079_v32, %v3376_v21  ;;  %v2132_v54 = vor.u32 %v2304_v18, %v2129_v55 }
 0x20c   : > { %1635 = vmatpush.bf16.msra.mxu2 %v2032_v10  ;;  %1663 = vmatpush.bf16.msrb.mxu0 %v2036_v44 }
 0x20e   : > { %1648 = vmatpush.bf16.msra.mxu3 %v2176_v52  ;;  %1676 = vmatpush.bf16.msrb.mxu1 %v2180_v46 }
 0x20f   : > { %v1139_v50 = vpop.permute.xlu1 %1138  ;;  %v1145_v63 = vpop.permute.xlu0 %1144 }
 0x210   : > { %v1148_v8 = vsel %vm779_vm2, %v3258_v60, %v1139_v50  ;;  %v1150_v19 = vsel %vm779_vm2, %v3391_v38, %v1145_v63  ;;  %v1151_v26 = vsel %vm779_vm2, %v1145_v63, %v1147_v16  ;;  %v2310_v60 = vld [vmem:[%s3567_s5 + $0x134] sm:$0xf0]  ;;  %1636 = vmatpush.bf16.msra.mxu2 %v2016_v41  ;;  %1664 = vmatpush.bf16.msrb.mxu0 %v2020_v14  ;;  %v1246_v16 = vperm.slane %v1244_v49, 0 }
 0x211   : > { %v1156_v37 = vadd.f32 %v1148_v8, %v1086_v1  ;;  %v1158_v53 = vadd.f32 %v1150_v19, %v1088_v20  ;;  %v2004_v38 = vor.u32 %v2272_v24, %v2001_v28  ;;  %v1159_v9 = vadd.f32 %v1151_v26, %v1089_v27 }
 0x212   : > { %1649 = vmatpush.bf16.msra.mxu3 %v2160_v43  ;;  %v2144_v42 = vor.u32 %v2310_v60, %v2143_v22  ;;  %1677 = vmatpush.bf16.msrb.mxu1 %v2164_v62  ;;  %v1249_v62 = vperm.slane %v1244_v49, 3 }
 0x213   : > { %v1166_v47 = vadd.f32 %v1162_v17, %v1156_v37  ;;  %v1168_v39 = vadd.f32 %v1162_v17, %v1158_v53  ;;  %v1169_v58 = vadd.f32 %v1163_v56, %v1159_v9 }
 0x214   : > { %1637 = vmatpush.bf16.msra.mxu2 %v2000_v31  ;;  %1665 = vmatpush.bf16.msrb.mxu0 %v2004_v38 }
 0x215   : > { %v1170_v29 = vmax.f32 %v1166_v47, 0.0  ;;  %v1172_v45 = vmax.f32 %v1168_v39, 0.0  ;;  %v1173_v51 = vmax.f32 %v1169_v58, 0.0 }
 0x216   : > { %1650 = vmatpush.bf16.msra.mxu3 %v2144_v42  ;;  %1678 = vmatpush.bf16.msrb.mxu1 %v2148_v35 }
 0x217   : > { %v1174_v40 = vmin.f32 %v1170_v29, 6.0  ;;  %v1176_v4 = vmin.f32 %v1172_v45, 6.0  ;;  %v1141_v2 = vpop.permute.xlu1 %1140  ;;  %v1177_v21 = vmin.f32 %v1173_v51, 6.0 }
 0x218   : > { %v1149_v25 = vsel %vm779_vm2, %v1139_v50, %v1141_v2 }
 0x219   : > { %v1157_v10 = vadd.f32 %v1149_v25, %v1087_v0  ;;  %v1178_v44 = vpack.c.bf16 %v1176_v4, %v1174_v40 }
 0x21a   : > { %1651 = vmatpush.bf16.msra.mxu3 %v2128_v30  ;;  %1679 = vmatpush.bf16.msrb.mxu1 %v2132_v54 }
 0x21b   : > { %v1167_v3 = vadd.f32 %v1163_v56, %v1157_v10  ;;  %1582 = vmatmul.bf16.vlgmr.msrb.gmra.mxu2 %v1178_v44  ;;  %1610 = vmatmul.bf16.vlgmr.msra.gmra.mxu0 %v1178_v44  ;;  %v1248_v56 = vperm.slane %v1244_v49, 2 }
 0x21d   : > { %v1171_v6 = vmax.f32 %v1167_v3, 0.0 }
 0x21f   : > { %v1175_v34 = vmin.f32 %v1171_v6, 6.0 }
 0x221   : > { %v1179_v12 = vpack.c.bf16 %v1177_v21, %v1175_v34 }
 0x223   : > { %1596 = vmatmul.bf16.vlgmr.msrb.gmra.mxu3 %v1179_v12  ;;  %1624 = vmatmul.bf16.vlgmr.msra.gmra.mxu1 %v1179_v12 }
 0x22b   : > { %1638 = vmatmul.bf16.vlgmr.msra.gmra.mxu2 %v1178_v44  ;;  %1666 = vmatmul.bf16.vlgmr.msrb.gmra.mxu0 %v1178_v44 }
 0x233   : > { %1652 = vmatmul.bf16.vlgmr.msra.gmra.mxu3 %v1179_v12  ;;  %1680 = vmatmul.bf16.vlgmr.msrb.gmra.mxu1 %v1179_v12 }
 0x298   : > { %v1611_v5 = vpop.f32.mrf.mxu0 }
 0x299   : > { %v1612_v61 = vadd.f32 %v1611_v5, %v1247_v13 }
 0x29e   : > { %v1583_v52 = vpop.f32.mrf.mxu2 }
 0x29f   : > { %v1584_v33 = vadd.f32 %v1583_v52, %v1246_v16 }
 0x2a0   : > { %v1625_v17 = vpop.f32.mrf.mxu1  ;;  %v1613_v46 = vpop.f32.mrf.mxu0 }
 0x2a1   : > { %v1626_v14 = vadd.f32 %v1625_v17, %v1612_v61  ;;  %v1614_v15 = vadd.f32 %v1613_v46, %v1247_v13 }
 0x2a3   : > { %v1687_v50 = vmax.f32 %v1626_v14, 0.0 }
 0x2a5   : > { %v1695_v19 = vmin.f32 %v1687_v50, 6.0 }
 0x2a6   : > { %v1597_v7 = vpop.f32.mrf.mxu3  ;;  %v1585_v41 = vpop.f32.mrf.mxu2 }
 0x2a7   : > { %v1598_v63 = vadd.f32 %v1597_v7, %v1584_v33  ;;  %v1586_v24 = vadd.f32 %v1585_v41, %v1246_v16 }
 0x2a8   : > { %v1627_v11 = vpop.f32.mrf.mxu1  ;;  %v1667_v20 = vpop.f32.mrf.mxu0 }
 0x2a9   : > { %v1628_v1 = vadd.f32 %v1627_v11, %v1614_v15  ;;  %v1686_v26 = vmax.f32 %v1598_v63, 0.0  ;;  %v1668_v48 = vadd.f32 %v1667_v20, %v1249_v62 }
 0x2ab   : > { %v1691_v23 = vmax.f32 %v1628_v1, 0.0  ;;  %v1694_v60 = vmin.f32 %v1686_v26, 6.0 }
 0x2ad   : > { %v1699_v28 = vmin.f32 %v1691_v23, 6.0 }
 0x2ae   : > { %v1599_v8 = vpop.f32.mrf.mxu3  ;;  %v1639_v27 = vpop.f32.mrf.mxu2 }
 0x2af   : > { %v1600_v43 = vadd.f32 %v1599_v8, %v1586_v24  ;;  %v1709_v53 = vadd.f32 %v1699_v28, %v1695_v19  ;;  %v1640_v57 = vadd.f32 %v1639_v27, %v1248_v56 }
 0x2b0   : > { %v1681_v37 = vpop.f32.mrf.mxu1  ;;  %v1669_v38 = vpop.f32.mrf.mxu0 }
 0x2b1   : > { %v1690_v22 = vmax.f32 %v1600_v43, 0.0  ;;  %v1710_v36 = vrot.slane %v1709_v53, 4  ;;  %v1682_v32 = vadd.f32 %v1681_v37, %v1668_v48  ;;  %v1670_v42 = vadd.f32 %v1669_v38, %v1249_v62 }
 0x2b3   : > { %v1698_v31 = vmin.f32 %v1690_v22, 6.0  ;;  %v1711_v45 = vadd.f32 %v1710_v36, %v1709_v53  ;;  %v1689_v0 = vmax.f32 %v1682_v32, 0.0 }
 0x2b5   : > { %v1702_v47 = vadd.f32 %v1698_v31, %v1694_v60  ;;  %v1712_v4 = vrot.slane %v1711_v45, 2  ;;  %v1697_v44 = vmin.f32 %v1689_v0, 6.0 }
 0x2b6   : > { %v1653_v9 = vpop.f32.mrf.mxu3  ;;  %v1641_v18 = vpop.f32.mrf.mxu2 }
 0x2b7   : > { %v1703_v39 = vrot.slane %v1702_v47, 4  ;;  %v1654_v40 = vadd.f32 %v1653_v9, %v1640_v57  ;;  %v1642_v25 = vadd.f32 %v1641_v18, %v1248_v56  ;;  %v1713_v6 = vadd.f32 %v1712_v4, %v1711_v45 }
 0x2b8   : > { %v1683_v29 = vpop.f32.mrf.mxu1 }
 0x2b9   : > { %v1704_v35 = vadd.f32 %v1703_v39, %v1702_v47  ;;  %v1684_v59 = vadd.f32 %v1683_v29, %v1670_v42  ;;  %v1688_v54 = vmax.f32 %v1654_v40, 0.0  ;;  %v1714_v46 = vrot.slane %v1713_v6, 1 }
 0x2bb   : > { %v1705_v55 = vrot.slane %v1704_v35, 2  ;;  %v1693_v58 = vmax.f32 %v1684_v59, 0.0  ;;  %v1696_v5 = vmin.f32 %v1688_v54, 6.0  ;;  %v1715_v7 = vadd.f32 %v1714_v46, %v1713_v6 }
 0x2bd   : > { %v1706_v2 = vadd.f32 %v1705_v55, %v1704_v35  ;;  %v1701_v30 = vmin.f32 %v1693_v58, 6.0 }
 0x2be   : > { %v1655_v10 = vpop.f32.mrf.mxu3 }
 0x2bf   : > { %v1656_v51 = vadd.f32 %v1655_v10, %v1642_v25  ;;  %v1707_v3 = vrot.slane %v1706_v2, 1  ;;  %v1723_v21 = vadd.f32 %v1701_v30, %v1697_v44 }
 0x2c1   : > { %v1692_v34 = vmax.f32 %v1656_v51, 0.0  ;;  %v1708_v12 = vadd.f32 %v1707_v3, %v1706_v2  ;;  %v1724_v52 = vrot.slane %v1723_v21, 4 }
 0x2c3   : > { %v1700_v49 = vmin.f32 %v1692_v34, 6.0  ;;  %1739 = vrot.lane.b32.xlu2 %v1708_v12, %s2453_s19  ;;  %1735 = vrot.lane.b32.xlu1 %v1708_v12, %s2457_s17  ;;  %v1725_v61 = vadd.f32 %v1724_v52, %v1723_v21 }
 0x2c4   : > { %1731 = vrot.lane.b32.xlu0 %v1708_v12, %s2456_s18 }
 0x2c5   : > { %v1716_v17 = vadd.f32 %v1700_v49, %v1696_v5  ;;  %v1726_v14 = vrot.slane %v1725_v61, 2 }
 0x2c7   : > { %v1717_v13 = vrot.slane %v1716_v17, 4  ;;  %v1727_v33 = vadd.f32 %v1726_v14, %v1725_v61 }
 0x2c9   : > { %v1718_v16 = vadd.f32 %v1717_v13, %v1716_v17  ;;  %v1728_v20 = vrot.slane %v1727_v33, 1 }
 0x2cb   : > { %v1719_v41 = vrot.slane %v1718_v16, 2  ;;  %1753 = vrot.lane.b32.xlu2 %v1715_v7, %s2453_s19  ;;  %1749 = vrot.lane.b32.xlu1 %v1715_v7, %s2457_s17  ;;  %v1729_v50 = vadd.f32 %v1728_v20, %v1727_v33 }
 0x2cc   : > { %1745 = vrot.lane.b32.xlu0 %v1715_v7, %s2456_s18 }
 0x2cd   : > { %v1720_v15 = vadd.f32 %v1719_v41, %v1718_v16 }
 0x2cf   : > { %v1721_v11 = vrot.slane %v1720_v15, 1 }
 0x2d1   : > { %v1722_v1 = vadd.f32 %v1721_v11, %v1720_v15 }
 0x2d3   : > { %1767 = vrot.lane.b32.xlu2 %v1722_v1, %s2453_s19  ;;  %1763 = vrot.lane.b32.xlu1 %v1722_v1, %s2457_s17 }
 0x2d4   : > { %1759 = vrot.lane.b32.xlu0 %v1722_v1, %s2456_s18 }
 0x2db   : > { %1781 = vrot.lane.b32.xlu2 %v1729_v50, %s2453_s19  ;;  %1777 = vrot.lane.b32.xlu1 %v1729_v50, %s2457_s17  ;;  %s269_s19 = sand.u32 1, %s2442_s25  }
 0x2dc   : > { %1773 = vrot.lane.b32.xlu0 %v1729_v50, %s2456_s18  ;;  %s270_s21 = scalar_lea.vmem [#allocation3], %s269_s19  ;;  %s1789_s8 = scalar_lea.sflag [#allocation4], %s269_s19 }
 0x2dd   : > { %s1799_s22 = sshll.u32 %s270_s21, 4  ;;  %s1800_s22 = int_to_ptr.vmem [resolvable:$true] %s1799_s22 }
 0x31d   : > { %v1740_v63 = vpop.permute.xlu2 %1739 }
 0x325   : > { %v1754_v27 = vpop.permute.xlu2 %1753 }
 0x32d   : > { %v1768_v48 = vpop.permute.xlu2 %1767 }
 0x335   : > { %v1736_v23 = vpop.permute.xlu1 %1735  ;;  %v1782_v45 = vpop.permute.xlu2 %1781 }
 0x336   : > { %v1732_v24 = vpop.permute.xlu0 %1731 }
 0x337   : > { %v1734_v28 = vadd.f32 %v1732_v24, %v1708_v12 }
 0x339   : > { %v1738_v8 = vadd.f32 %v1736_v23, %v1734_v28 }
 0x33b   : > { %v1742_v19 = vadd.f32 %v1740_v63, %v1738_v8 }
 0x33d   : > { %v1750_v26 = vpop.permute.xlu1 %1749  ;;  %v1743_v43 = vadd.f32 %v1742_v19, %v1715_v7 }
 0x33e   : > { %v1746_v37 = vpop.permute.xlu0 %1745 }
 0x33f   : > { %v1748_v53 = vadd.f32 %v1746_v37, %v1743_v43 }
 0x341   : > { %v1752_v62 = vadd.f32 %v1750_v26, %v1748_v53 }
 0x343   : > { %v1756_v22 = vadd.f32 %v1754_v27, %v1752_v62 }
 0x345   : > { %v1757_v60 = vadd.f32 %v1756_v22, %v1722_v1  ;;  %v1764_v31 = vpop.permute.xlu1 %1763 }
 0x346   : > { %v1760_v38 = vpop.permute.xlu0 %1759 }
 0x347   : > { %v1762_v36 = vadd.f32 %v1760_v38, %v1757_v60 }
 0x349   : > { %v1766_v47 = vadd.f32 %v1764_v31, %v1762_v36 }
 0x34b   : > { %v1770_v56 = vadd.f32 %v1768_v48, %v1766_v47 }
 0x34d   : > { %v1771_v9 = vadd.f32 %v1770_v56, %v1729_v50  ;;  %v1778_v42 = vpop.permute.xlu1 %1777 }
 0x34e   : > { %v1774_v39 = vpop.permute.xlu0 %1773 }
 0x34f   : > { %v1776_v32 = vadd.f32 %v1774_v39, %v1771_v9 }
 0x351   : > { %v1780_v29 = vadd.f32 %v1778_v42, %v1776_v32 }
 0x353   : > { %v1784_v35 = vadd.f32 %v1782_v45, %v1780_v29 }
 0x355   : > { %v1785_v57 = vmul.f32 0.00390625, %v1784_v35 }
 0x357   : > { %1787 = vst.msk [vmem:[%s270_s21] sm:$0x1] %vm1786_vm3, %v1785_v57 }
 0x358   : > { %2415 = shalt.err (!%p2412_p3)
}
 0x359   : > { %2343 = dma.vmem_to_hbm [thread:$0]  (%p2536_p5), %s1800_s22, 16, %s1802_s29, %s1789_s8  }
 0x35a PF: > { %p2349_p4 = scmp.ge.s32.totalorder %s2450_s27, 2  ;;  %s1813_s19 = sand.u32 1, %s2438_s24  }
 0x35b   : > { %s1814_s18 = scalar_lea.sflag [#allocation4], %s1813_s19 }
 0x35c   : > { %p2346_p7 = pnand %p2349_p4, %p2540_p6 }
 0x35e   : > { %p2347_p8 = pneg %p2346_p7 }
 0x360   : > { %2433 = dma.done.wait (%p2347_p8), %s1814_s18, 16  }
 0x361   : > { %2435 = vsyncadd (%p2347_p8), %s1814_s18, 4294967280  ;;  %p17_p9 = scmp.ge.s32.totalorder %s2523_s30, 4   ;;  %s3572_s24 = smov %s2442_s25 }
 0x362   : > { %s3573_s25 = smov %s2446_s26  ;;  %s3574_s26 = smov %s2534_s10 }
 0x363   : > { %s3575_s27 = smov %s2523_s30  ;;  %19 = sbr.rel (!%p17_p9) target bundleno = 3 (0x3), region = 94 }
 0x368   :  { %1819 = vsyncpa [#allocation4], 1 }
 0x369   :  { %1821 = vsyncpa [#allocation4 + $0x1], 1 }

</bundles_post_ra>
